<compile_context>
chip_gen: v6e
topology: v6e:2x2x1
jax: 0.10.0
libtpu: 0.0.40
codegen_flags: <defaults>
</compile_context>

<pallas_src>
import math

import jax
import jax.numpy as jnp
from jax.experimental import pallas as pl
from jax.experimental.pallas import tpu as pltpu

# ---- config (stand-in for MODEL_CONFIG['gnn_encoder']) ----
NODE_DIM = 16
EDGE_DIM = 8
HIDDEN_DIM = 32
OUTPUT_DIM = 32
NUM_LAYERS = 2
DROPOUT = 0.1          # inference -> identity
READOUT = "mean"       # non-attention readout branch
NUM_HEADS = 4
HEAD_DIM = OUTPUT_DIM // NUM_HEADS
LN_EPS = 1e-5


# ----------------------------------------------------------------------------
# weight-slab layouts (shared by pack_params and the kernel; all static ints)
# ----------------------------------------------------------------------------
def _wa_layout():
    entries = [("wt", NODE_DIM)]
    for li in range(NUM_LAYERS):
        entries += [(f"wl{li}", HIDDEN_DIM),
                    (f"wee1_{li}", EDGE_DIM),
                    (f"wee2_{li}", HIDDEN_DIM)]
    entries += [("wr1", HIDDEN_DIM), ("wr2", OUTPUT_DIM),
                ("wo", OUTPUT_DIM), ("fm1", OUTPUT_DIM), ("fm2", OUTPUT_DIM)]
    offs, off = {}, 0
    for name, rows in entries:
        offs[name] = (off, rows)
        off += rows
    return [n for n, _ in entries], offs, off


WA_ORDER, WA_OFF, WA_TOTAL_ROWS = _wa_layout()

B32_ORDER = (["bt"]
             + [nm for li in range(NUM_LAYERS)
                for nm in (f"bl{li}", f"bee1_{li}", f"bee2_{li}")]
             + ["br1", "br2", "bo", "fm1b", "fm2b",
                "gnn_ln_g", "gnn_ln_b", "ln_g", "ln_b"])
B32_IDX = {n: i for i, n in enumerate(B32_ORDER)}

WB_ORDER = ["wih", "whh", "wqkv"]          # each [OUTPUT_DIM, 3*OUTPUT_DIM]
WB_OFF = {n: i * OUTPUT_DIM for i, n in enumerate(WB_ORDER)}
B96_ORDER = ["bih", "bhh", "bqkv"]
B96_IDX = {n: i for i, n in enumerate(B96_ORDER)}


def _full_spec(shape):
    """Full-array block (single grid step loads it once)."""
    return pl.BlockSpec(shape, lambda i, _n=len(shape): (0,) * _n)


# ----------------------------------------------------------------------------
# the single fused kernel
# ----------------------------------------------------------------------------
def _fused_kernel(x_ref, ea_ref, t_ref, gat_ref, scat_ref, msel_ref, pmat_ref,
                  wa_ref, wb_ref, b32_ref, b96_ref, o_ref):
    def dot(a, bm):
        return jnp.dot(a, bm, preferred_element_type=jnp.float32)

    def wA(name):                                   # static row slice of slab A
        off, rows = WA_OFF[name]
        return wa_ref[pl.ds(off, rows), :]

    def wB(name):                                   # static row slice of slab B
        return wb_ref[pl.ds(WB_OFF[name], OUTPUT_DIM), :]

    b32 = b32_ref[...]                              # [16, 32]
    b96 = b96_ref[...]                              # [3, 96]

    def b(name):
        i = B32_IDX[name]
        return b32[i:i + 1, :]                      # [1, 32]

    def b3(name):
        i = B96_IDX[name]
        return b96[i:i + 1, :]                      # [1, 96]

    x = x_ref[...]                                  # [G*N, node_dim]
    ea = ea_ref[...]                                # [G*E, edge_dim]
    gat = gat_ref[...]                              # [G*E, G*N]   gather(src)
    scat = scat_ref[...]                            # [G*N, G*E]   scatter-mean(dst)
    msel = msel_ref[...]                            # [G*E, E*H]   block-diag selector
    pmat = pmat_ref[...]                            # [G,   G*N]   per-graph mean pool
    n_edges = msel.shape[1] // HIDDEN_DIM

    # input_transform (shared weights, all graphs batched in the rows)
    h = dot(x, wA("wt")) + b("bt")                                  # [G*N, H]

    reps = []
    for li in range(NUM_LAYERS):
        x_res = h
        x_lin = dot(h, wA(f"wl{li}")) + b(f"bl{li}")                # [G*N, H]
        x_j = dot(gat, x_lin)                                       # [G*E, H]
        # per-edge transform msg[e] = x_j[e] @ T[e] as ONE K=E*H matmul:
        # block-diagonal expansion of x_j against the stacked transforms
        bd = jnp.concatenate([x_j] * n_edges, axis=1) * msel        # [G*E, E*H]
        msg = dot(bd, t_ref[li])                                    # [G*E, H]
        # edge-feature encoder
        e1 = jnp.maximum(dot(ea, wA(f"wee1_{li}")) + b(f"bee1_{li}"), 0.0)
        ef = dot(e1, wA(f"wee2_{li}")) + b(f"bee2_{li}")            # [G*E, H]
        # scatter-mean aggregation at destination nodes
        agg = dot(scat, msg + ef)                                   # [G*N, H]
        # relu + dropout(p=DROPOUT -> identity at inference) + residual
        h = jnp.maximum(agg, 0.0) + x_res
        # readout: per-graph mean pool -> Linear -> ReLU -> (Dropout=id) -> Linear
        pooled = dot(pmat, h)                                       # [G, H]
        rep = jnp.maximum(dot(pooled, wA("wr1")) + b("br1"), 0.0)
        rep = dot(rep, wA("wr2")) + b("br2")                        # [G, O]
        reps.append(rep)

    # GRUCell chain over layer representations (batched over graphs)
    hrep = reps[0]
    d = OUTPUT_DIM
    for li in range(1, NUM_LAYERS):
        gi = dot(reps[li], wB("wih")) + b3("bih")                   # [G, 3*O]
        gh = dot(hrep, wB("whh")) + b3("bhh")
        r = jax.nn.sigmoid(gi[:, :d] + gh[:, :d])
        z = jax.nn.sigmoid(gi[:, d:2 * d] + gh[:, d:2 * d])
        n = jnp.tanh(gi[:, 2 * d:] + r * gh[:, 2 * d:])
        hrep = (1.0 - z) * n + z * hrep

    # LayerNorm -> per-graph layer embeddings [G, O]
    mu = jnp.mean(hrep, axis=-1, keepdims=True)
    var = jnp.mean(jnp.square(hrep - mu), axis=-1, keepdims=True)
    seq = ((hrep - mu) * jax.lax.rsqrt(var + LN_EPS)
           * b("gnn_ln_g") + b("gnn_ln_b"))

    # multihead attention over the G layer embeddings (fused Q/K/V projection)
    qkv = dot(seq, wB("wqkv")) + b3("bqkv")                         # [G, 3*O]
    q, k, v = qkv[:, :d], qkv[:, d:2 * d], qkv[:, 2 * d:]
    scale = 1.0 / math.sqrt(HEAD_DIM)
    ctx = []
    for hh in range(NUM_HEADS):
        lo, hi = hh * HEAD_DIM, (hh + 1) * HEAD_DIM
        qh, kh, vh = q[:, lo:hi], k[:, lo:hi], v[:, lo:hi]
        s = jax.lax.dot_general(qh, kh, (((1,), (1,)), ((), ())),
                                preferred_element_type=jnp.float32) * scale
        s = s - jnp.max(s, axis=-1, keepdims=True)
        p = jnp.exp(s)
        p = p / jnp.sum(p, axis=-1, keepdims=True)                  # exact softmax
        ctx.append(dot(p, vh))                                      # [G, HEAD_DIM]
    attn = dot(jnp.concatenate(ctx, axis=1), wA("wo")) + b("bo")    # [G, O]

    # mean over layer embeddings + final MLP + LayerNorm
    pooled = jnp.mean(attn, axis=0, keepdims=True)                  # [1, O]
    y = jnp.maximum(dot(pooled, wA("fm1")) + b("fm1b"), 0.0)
    y = dot(y, wA("fm2")) + b("fm2b")
    mu = jnp.mean(y, axis=-1, keepdims=True)
    var = jnp.mean(jnp.square(y - mu), axis=-1, keepdims=True)
    o_ref[...] = ((y - mu) * jax.lax.rsqrt(var + LN_EPS)
                  * b("ln_g") + b("ln_b"))


# ----------------------------------------------------------------------------
# parameter init (deterministic, synthetic) and packing into slabs
# ----------------------------------------------------------------------------
def init_linear(key, in_dim, out_dim):
    kw, kb = jax.random.split(key)
    bound = 1.0 / math.sqrt(in_dim)
    w = jax.random.uniform(kw, (in_dim, out_dim), jnp.float32, -bound, bound)
    b = jax.random.uniform(kb, (out_dim,), jnp.float32, -bound, bound)
    return w, b


def init_params(key):
    keys = iter(jax.random.split(key, 64))
    p = {}
    p["input_transform"] = init_linear(next(keys), NODE_DIM, HIDDEN_DIM)
    p["convs"] = []
    for _ in range(NUM_LAYERS):
        c = {
            "linear": init_linear(next(keys), HIDDEN_DIM, HIDDEN_DIM),
            "ee1": init_linear(next(keys), EDGE_DIM, HIDDEN_DIM),
            "ee2": init_linear(next(keys), HIDDEN_DIM, HIDDEN_DIM),
            "tg1": init_linear(next(keys), 2, 32),
            "tg2": init_linear(next(keys), 32, HIDDEN_DIM * HIDDEN_DIM),
        }
        # TODO(synk): nn.init.orthogonal_ replaced with deterministic uniform init; biases kept zero
        c["tg1"] = (c["tg1"][0], jnp.zeros_like(c["tg1"][1]))
        c["tg2"] = (c["tg2"][0], jnp.zeros_like(c["tg2"][1]))
        p["convs"].append(c)
    p["readout1"] = init_linear(next(keys), HIDDEN_DIM, OUTPUT_DIM)
    p["readout2"] = init_linear(next(keys), OUTPUT_DIM, OUTPUT_DIM)
    bound = 1.0 / math.sqrt(OUTPUT_DIM)
    k1, k2, k3, k4 = jax.random.split(next(keys), 4)
    p["gru"] = dict(
        wih=jax.random.uniform(k1, (OUTPUT_DIM, 3 * OUTPUT_DIM), jnp.float32, -bound, bound),
        whh=jax.random.uniform(k2, (OUTPUT_DIM, 3 * OUTPUT_DIM), jnp.float32, -bound, bound),
        bih=jax.random.uniform(k3, (3 * OUTPUT_DIM,), jnp.float32, -bound, bound),
        bhh=jax.random.uniform(k4, (3 * OUTPUT_DIM,), jnp.float32, -bound, bound),
    )
    p["gnn_ln"] = (jnp.ones((OUTPUT_DIM,), jnp.float32), jnp.zeros((OUTPUT_DIM,), jnp.float32))
    for name in ("q", "k", "v", "o"):
        p[name] = init_linear(next(keys), OUTPUT_DIM, OUTPUT_DIM)
    p["fm1"] = init_linear(next(keys), OUTPUT_DIM, OUTPUT_DIM)
    p["fm2"] = init_linear(next(keys), OUTPUT_DIM, OUTPUT_DIM)
    p["ln"] = (jnp.ones((OUTPUT_DIM,), jnp.float32), jnp.zeros((OUTPUT_DIM,), jnp.float32))
    return p


def pack_params(p):
    """Pack weights into a few lane-dense slabs for the fused kernel."""
    def stk(name, idx):
        return jnp.stack([p["convs"][li][name][idx] for li in range(NUM_LAYERS)])

    pk = {}
    # transform_generator weights stay separate: consumed by the tiny XLA precompute
    pk["wtg1"], pk["btg1"] = stk("tg1", 0), stk("tg1", 1).reshape(NUM_LAYERS, 1, -1)
    pk["wtg2"], pk["btg2"] = stk("tg2", 0), stk("tg2", 1).reshape(NUM_LAYERS, 1, -1)

    wq, bq = p["q"]
    wk, bk = p["k"]
    wv, bv = p["v"]
    wo, bo = p["o"]

    wa_parts = {
        "wt": p["input_transform"][0],
        "wr1": p["readout1"][0], "wr2": p["readout2"][0],
        "wo": wo, "fm1": p["fm1"][0], "fm2": p["fm2"][0],
    }
    b32_parts = {
        "bt": p["input_transform"][1],
        "br1": p["readout1"][1], "br2": p["readout2"][1],
        "bo": bo, "fm1b": p["fm1"][1], "fm2b": p["fm2"][1],
        "gnn_ln_g": p["gnn_ln"][0], "gnn_ln_b": p["gnn_ln"][1],
        "ln_g": p["ln"][0], "ln_b": p["ln"][1],
    }
    for li in range(NUM_LAYERS):
        c = p["convs"][li]
        wa_parts[f"wl{li}"], b32_parts[f"bl{li}"] = c["linear"]
        wa_parts[f"wee1_{li}"], b32_parts[f"bee1_{li}"] = c["ee1"]
        wa_parts[f"wee2_{li}"], b32_parts[f"bee2_{li}"] = c["ee2"]

    pk["wa"] = jnp.concatenate([wa_parts[n] for n in WA_ORDER], axis=0)   # [320, 32]
    pk["b32"] = jnp.stack([b32_parts[n] for n in B32_ORDER], axis=0)      # [16, 32]

    g = p["gru"]
    wqkv = jnp.concatenate([wq, wk, wv], axis=1)                          # [32, 96]
    bqkv = jnp.concatenate([bq, bk, bv], axis=0)                          # [96]
    pk["wb"] = jnp.concatenate([g["wih"], g["whh"], wqkv], axis=0)        # [96, 96]
    pk["b96"] = jnp.stack([g["bih"], g["bhh"], bqkv], axis=0)             # [3, 96]
    return pk


# ----------------------------------------------------------------------------
# forward: tiny XLA structure preprocessing + ONE fused pallas_call
# ----------------------------------------------------------------------------
@jax.jit
def model_embedder_forward(pk, x_all, edge_index, ea_all):
    """x_all: [num_graphs, N, node_dim]; ea_all: [num_graphs, E, edge_dim]."""
    num_graphs, n_nodes, _ = x_all.shape
    num_edges = ea_all.shape[1]
    if num_edges != n_nodes:
        raise ValueError("literal GeometricMessagePassing.message() semantics "
                         "require num_edges == num_nodes")

    src, dst = edge_index[0], edge_index[1]
    # node-degree invariants (shared edge_index -> shared across graphs)
    deg_i = jnp.zeros((n_nodes,), jnp.float32).at[dst].add(1.0)
    deg_j = jnp.zeros((n_nodes,), jnp.float32).at[src].add(1.0)
    inv = jnp.stack([deg_i, deg_j], axis=1)
    inv = inv / (jnp.sum(inv, axis=1, keepdims=True) + 1e-8)              # [N, 2]

    # transform_generator (tiny, structure-only): plain XLA per perf review,
    # stacked so that t_all[li, e*H + i, j] = T_li[e][i, j]
    t_stacks = []
    for li in range(NUM_LAYERS):
        tmid = jax.nn.relu(inv @ pk["wtg1"][li] + pk["btg1"][li])         # [N, 32]
        t_flat = tmid @ pk["wtg2"][li] + pk["btg2"][li]                   # [N, H*H]
        t_stacks.append(t_flat.reshape(num_edges * HIDDEN_DIM, HIDDEN_DIM))
    t_all = jnp.stack(t_stacks)                                           # [L, E*H, H]

    # dense structure matrices, block-diagonal across the graph batch
    node_ids = jnp.arange(n_nodes)
    gat1 = (src[:, None] == node_ids[None, :]).astype(jnp.float32)        # [E, N]
    scat1 = (dst[None, :] == node_ids[:, None]).astype(jnp.float32)       # [N, E]
    scat1 = scat1 / jnp.maximum(jnp.sum(scat1, axis=1, keepdims=True), 1.0)
    eye_g = jnp.eye(num_graphs, dtype=jnp.float32)
    gat = jnp.kron(eye_g, gat1)                                           # [G*E, G*N]
    scat = jnp.kron(eye_g, scat1)                                         # [G*N, G*E]
    pmat = jnp.kron(eye_g, jnp.full((1, n_nodes), 1.0 / n_nodes, jnp.float32))  # [G, G*N]
    # one-hot selector for the block-diagonal per-edge-transform matmul
    e_ids = jnp.arange(num_edges)
    sel = (jnp.tile(e_ids, num_graphs)[:, None] == e_ids[None, :]).astype(jnp.float32)
    msel = jnp.repeat(sel, HIDDEN_DIM, axis=1)                            # [G*E, E*H]

    x_flat = x_all.reshape(num_graphs * n_nodes, -1)
    ea_flat = ea_all.reshape(num_graphs * num_edges, -1)

    args = (x_flat, ea_flat, t_all, gat, scat, msel, pmat,
            pk["wa"], pk["wb"], pk["b32"], pk["b96"])
    return pl.pallas_call(
        _fused_kernel,
        grid=(1,),
        in_specs=[_full_spec(a.shape) for a in args],
        out_specs=_full_spec((1, OUTPUT_DIM)),
        out_shape=jax.ShapeDtypeStruct((1, OUTPUT_DIM), jnp.float32),
        compiler_params=pltpu.CompilerParams(dimension_semantics=("arbitrary",)),
    )(*args)


# ----------------------------------------------------------------------------
if __name__ == "__main__":
    key = jax.random.PRNGKey(0)
    pkey, dkey = jax.random.split(key)
    params = init_params(pkey)
    packed = pack_params(params)

    N, L = 8, 3
    src = jnp.arange(N, dtype=jnp.int32)
    dst = jnp.roll(src, -1)                 # ring graph: E == N (required by literal semantics)
    edge_index = jnp.stack([src, dst], axis=0)

    dkeys = jax.random.split(dkey, 2 * L)
    xs = jnp.stack([jax.random.normal(dkeys[2 * li], (N, NODE_DIM), jnp.float32)
                    for li in range(L)])                             # [L, N, node_dim]
    eas = jnp.stack([jax.random.normal(dkeys[2 * li + 1], (N, EDGE_DIM), jnp.float32)
                     for li in range(L)])                            # [L, E, edge_dim]

    out = model_embedder_forward(packed, xs, edge_index, eas)
    out = jax.block_until_ready(out)
    assert out.shape == (1, OUTPUT_DIM)
    assert bool(jnp.all(jnp.isfinite(out)))
    print("KERNEL_OK")
</pallas_src>

<mosaic_0001>
module attributes {stable_mosaic.version = 11 : i64} {
  func.func private @main(%arg0: i32) attributes {dimension_semantics = [#tpu.dimension_semantics<core_parallel>], iteration_bounds = array<i64: 2>, tpu.core_type = #tpu.core_type<sc_scalar_subcore>, window_params = []} {
    return
  }
}

module attributes {stable_mosaic.version = 11 : i64} {
  func.func private @main(%arg0: i32) attributes {dimension_semantics = [#tpu.dimension_semantics<core_parallel>], iteration_bounds = array<i64: 2>, tpu.core_type = #tpu.core_type<sc_scalar_subcore>, window_params = []} {
    return
  }
}

module attributes {stable_mosaic.version = 11 : i64} {
  func.func @_fused_kernel(%arg0: i32, %arg1: memref<24x16xf32, #tpu.memory_space<vmem>>, %arg2: memref<24x8xf32, #tpu.memory_space<vmem>>, %arg3: memref<2x256x32xf32, #tpu.memory_space<vmem>>, %arg4: memref<24x24xf32, #tpu.memory_space<vmem>>, %arg5: memref<24x24xf32, #tpu.memory_space<vmem>>, %arg6: memref<24x256xf32, #tpu.memory_space<vmem>>, %arg7: memref<3x24xf32, #tpu.memory_space<vmem>>, %arg8: memref<320x32xf32, #tpu.memory_space<vmem>>, %arg9: memref<96x96xf32, #tpu.memory_space<vmem>>, %arg10: memref<16x32xf32, #tpu.memory_space<vmem>>, %arg11: memref<3x96xf32, #tpu.memory_space<vmem>>, %arg12: memref<1x32xf32, #tpu.memory_space<vmem>>) attributes {dimension_semantics = [#tpu.dimension_semantics<arbitrary>], iteration_bounds = array<i64: 1>, scalar_prefetch = 0 : i64, scratch_operands = 0 : i64, tpu.core_type = #tpu.core_type<tc>, window_params = [{pipeline_mode = #tpu.pipeline_mode<synchronous>, transform_indices = @transform_0, window_bounds = array<i64: 24, 16>}, {pipeline_mode = #tpu.pipeline_mode<synchronous>, transform_indices = @transform_1, window_bounds = array<i64: 24, 8>}, {pipeline_mode = #tpu.pipeline_mode<synchronous>, transform_indices = @transform_2, window_bounds = array<i64: 2, 256, 32>}, {pipeline_mode = #tpu.pipeline_mode<synchronous>, transform_indices = @transform_3, window_bounds = array<i64: 24, 24>}, {pipeline_mode = #tpu.pipeline_mode<synchronous>, transform_indices = @transform_4, window_bounds = array<i64: 24, 24>}, {pipeline_mode = #tpu.pipeline_mode<synchronous>, transform_indices = @transform_5, window_bounds = array<i64: 24, 256>}, {pipeline_mode = #tpu.pipeline_mode<synchronous>, transform_indices = @transform_6, window_bounds = array<i64: 3, 24>}, {pipeline_mode = #tpu.pipeline_mode<synchronous>, transform_indices = @transform_7, window_bounds = array<i64: 320, 32>}, {pipeline_mode = #tpu.pipeline_mode<synchronous>, transform_indices = @transform_8, window_bounds = array<i64: 96, 96>}, {pipeline_mode = #tpu.pipeline_mode<synchronous>, transform_indices = @transform_9, window_bounds = array<i64: 16, 32>}, {pipeline_mode = #tpu.pipeline_mode<synchronous>, transform_indices = @transform_10, window_bounds = array<i64: 3, 96>}, {pipeline_mode = #tpu.pipeline_mode<synchronous>, transform_indices = @transform_11, window_bounds = array<i64: 1, 32>}]} {
    %c0 = arith.constant 0 : index
    %c0_0 = arith.constant 0 : index
    %0 = vector.load %arg10[%c0, %c0_0] : memref<16x32xf32, #tpu.memory_space<vmem>>, vector<16x32xf32>
    %c0_1 = arith.constant 0 : index
    %c0_2 = arith.constant 0 : index
    %1 = vector.load %arg11[%c0_1, %c0_2] : memref<3x96xf32, #tpu.memory_space<vmem>>, vector<3x96xf32>
    %c0_3 = arith.constant 0 : index
    %c0_4 = arith.constant 0 : index
    %2 = vector.load %arg1[%c0_3, %c0_4] : memref<24x16xf32, #tpu.memory_space<vmem>>, vector<24x16xf32>
    %c0_5 = arith.constant 0 : index
    %c0_6 = arith.constant 0 : index
    %3 = vector.load %arg2[%c0_5, %c0_6] : memref<24x8xf32, #tpu.memory_space<vmem>>, vector<24x8xf32>
    %c0_7 = arith.constant 0 : index
    %c0_8 = arith.constant 0 : index
    %4 = vector.load %arg4[%c0_7, %c0_8] : memref<24x24xf32, #tpu.memory_space<vmem>>, vector<24x24xf32>
    %c0_9 = arith.constant 0 : index
    %c0_10 = arith.constant 0 : index
    %5 = vector.load %arg5[%c0_9, %c0_10] : memref<24x24xf32, #tpu.memory_space<vmem>>, vector<24x24xf32>
    %c0_11 = arith.constant 0 : index
    %c0_12 = arith.constant 0 : index
    %6 = vector.load %arg6[%c0_11, %c0_12] : memref<24x256xf32, #tpu.memory_space<vmem>>, vector<24x256xf32>
    %c0_13 = arith.constant 0 : index
    %c0_14 = arith.constant 0 : index
    %7 = vector.load %arg7[%c0_13, %c0_14] : memref<3x24xf32, #tpu.memory_space<vmem>>, vector<3x24xf32>
    %c0_15 = arith.constant 0 : index
    %c0_16 = arith.constant 0 : index
    %8 = vector.load %arg8[%c0_15, %c0_16] : memref<320x32xf32, #tpu.memory_space<vmem>>, vector<16x32xf32>
    %cst = arith.constant dense<0.000000e+00> : vector<24x32xf32>
    %9 = tpu.matmul %2, %8, %cst {dimension_numbers = #tpu.dot_dimension_numbers<[1], [0], [0], [1], [0, 0, 1, 1], [], []>} : vector<24x16xf32>, vector<16x32xf32>, vector<24x32xf32> -> vector<24x32xf32>
    %10 = vector.extract_strided_slice %0 {offsets = [0, 0], sizes = [1, 32], strides = [1, 1]} : vector<16x32xf32> to vector<1x32xf32>
    %11 = vector.broadcast %10 : vector<1x32xf32> to vector<24x32xf32>
    %12 = arith.addf %9, %11 : vector<24x32xf32>
    %c16 = arith.constant 16 : index
    %c0_17 = arith.constant 0 : index
    %13 = vector.load %arg8[%c16, %c0_17] : memref<320x32xf32, #tpu.memory_space<vmem>>, vector<32x32xf32>
    %cst_18 = arith.constant dense<0.000000e+00> : vector<24x32xf32>
    %14 = tpu.matmul %12, %13, %cst_18 {dimension_numbers = #tpu.dot_dimension_numbers<[1], [0], [0], [1], [0, 0, 1, 1], [], []>} : vector<24x32xf32>, vector<32x32xf32>, vector<24x32xf32> -> vector<24x32xf32>
    %15 = vector.extract_strided_slice %0 {offsets = [1, 0], sizes = [1, 32], strides = [1, 1]} : vector<16x32xf32> to vector<1x32xf32>
    %16 = vector.broadcast %15 : vector<1x32xf32> to vector<24x32xf32>
    %17 = arith.addf %14, %16 : vector<24x32xf32>
    %cst_19 = arith.constant dense<0.000000e+00> : vector<24x32xf32>
    %18 = tpu.matmul %4, %17, %cst_19 {dimension_numbers = #tpu.dot_dimension_numbers<[1], [0], [0], [1], [0, 0, 1, 1], [], []>} : vector<24x24xf32>, vector<24x32xf32>, vector<24x32xf32> -> vector<24x32xf32>
    %19 = tpu.concatenate %18, %18, %18, %18, %18, %18, %18, %18 in 1 : vector<24x32xf32>, vector<24x32xf32>, vector<24x32xf32>, vector<24x32xf32>, vector<24x32xf32>, vector<24x32xf32>, vector<24x32xf32>, vector<24x32xf32> -> vector<24x256xf32>
    %20 = arith.mulf %19, %6 : vector<24x256xf32>
    %c0_20 = arith.constant 0 : index
    %c0_21 = arith.constant 0 : index
    %c0_22 = arith.constant 0 : index
    %21 = vector.load %arg3[%c0_20, %c0_21, %c0_22] : memref<2x256x32xf32, #tpu.memory_space<vmem>>, vector<1x256x32xf32>
    %22 = vector.shape_cast %21 : vector<1x256x32xf32> to vector<256x32xf32>
    %cst_23 = arith.constant dense<0.000000e+00> : vector<24x32xf32>
    %23 = tpu.matmul %20, %22, %cst_23 {dimension_numbers = #tpu.dot_dimension_numbers<[1], [0], [0], [1], [0, 0, 1, 1], [], []>} : vector<24x256xf32>, vector<256x32xf32>, vector<24x32xf32> -> vector<24x32xf32>
    %c48 = arith.constant 48 : index
    %c0_24 = arith.constant 0 : index
    %24 = vector.load %arg8[%c48, %c0_24] : memref<320x32xf32, #tpu.memory_space<vmem>>, vector<8x32xf32>
    %cst_25 = arith.constant dense<0.000000e+00> : vector<24x32xf32>
    %25 = tpu.matmul %3, %24, %cst_25 {dimension_numbers = #tpu.dot_dimension_numbers<[1], [0], [0], [1], [0, 0, 1, 1], [], []>} : vector<24x8xf32>, vector<8x32xf32>, vector<24x32xf32> -> vector<24x32xf32>
    %26 = vector.extract_strided_slice %0 {offsets = [2, 0], sizes = [1, 32], strides = [1, 1]} : vector<16x32xf32> to vector<1x32xf32>
    %27 = vector.broadcast %26 : vector<1x32xf32> to vector<24x32xf32>
    %28 = arith.addf %25, %27 : vector<24x32xf32>
    %cst_26 = arith.constant 0.000000e+00 : f32
    %29 = vector.broadcast %cst_26 : f32 to vector<24x32xf32>
    %30 = arith.maximumf %28, %29 : vector<24x32xf32>
    %c56 = arith.constant 56 : index
    %c0_27 = arith.constant 0 : index
    %31 = vector.load %arg8[%c56, %c0_27] : memref<320x32xf32, #tpu.memory_space<vmem>>, vector<32x32xf32>
    %cst_28 = arith.constant dense<0.000000e+00> : vector<24x32xf32>
    %32 = tpu.matmul %30, %31, %cst_28 {dimension_numbers = #tpu.dot_dimension_numbers<[1], [0], [0], [1], [0, 0, 1, 1], [], []>} : vector<24x32xf32>, vector<32x32xf32>, vector<24x32xf32> -> vector<24x32xf32>
    %33 = vector.extract_strided_slice %0 {offsets = [3, 0], sizes = [1, 32], strides = [1, 1]} : vector<16x32xf32> to vector<1x32xf32>
    %34 = vector.broadcast %33 : vector<1x32xf32> to vector<24x32xf32>
    %35 = arith.addf %32, %34 : vector<24x32xf32>
    %36 = arith.addf %23, %35 : vector<24x32xf32>
    %cst_29 = arith.constant dense<0.000000e+00> : vector<24x32xf32>
    %37 = tpu.matmul %5, %36, %cst_29 {dimension_numbers = #tpu.dot_dimension_numbers<[1], [0], [0], [1], [0, 0, 1, 1], [], []>} : vector<24x24xf32>, vector<24x32xf32>, vector<24x32xf32> -> vector<24x32xf32>
    %cst_30 = arith.constant 0.000000e+00 : f32
    %38 = vector.broadcast %cst_30 : f32 to vector<24x32xf32>
    %39 = arith.maximumf %37, %38 : vector<24x32xf32>
    %40 = arith.addf %39, %12 : vector<24x32xf32>
    %cst_31 = arith.constant dense<0.000000e+00> : vector<3x32xf32>
    %41 = tpu.matmul %7, %40, %cst_31 {dimension_numbers = #tpu.dot_dimension_numbers<[1], [0], [0], [1], [0, 0, 1, 1], [], []>} : vector<3x24xf32>, vector<24x32xf32>, vector<3x32xf32> -> vector<3x32xf32>
    %c160 = arith.constant 160 : index
    %c0_32 = arith.constant 0 : index
    %42 = vector.load %arg8[%c160, %c0_32] : memref<320x32xf32, #tpu.memory_space<vmem>>, vector<32x32xf32>
    %cst_33 = arith.constant dense<0.000000e+00> : vector<3x32xf32>
    %43 = tpu.matmul %41, %42, %cst_33 {dimension_numbers = #tpu.dot_dimension_numbers<[1], [0], [0], [1], [0, 0, 1, 1], [], []>} : vector<3x32xf32>, vector<32x32xf32>, vector<3x32xf32> -> vector<3x32xf32>
    %44 = vector.extract_strided_slice %0 {offsets = [7, 0], sizes = [1, 32], strides = [1, 1]} : vector<16x32xf32> to vector<1x32xf32>
    %45 = vector.broadcast %44 : vector<1x32xf32> to vector<3x32xf32>
    %46 = arith.addf %43, %45 : vector<3x32xf32>
    %cst_34 = arith.constant 0.000000e+00 : f32
    %47 = vector.broadcast %cst_34 : f32 to vector<3x32xf32>
    %48 = arith.maximumf %46, %47 : vector<3x32xf32>
    %c192 = arith.constant 192 : index
    %c0_35 = arith.constant 0 : index
    %49 = vector.load %arg8[%c192, %c0_35] : memref<320x32xf32, #tpu.memory_space<vmem>>, vector<32x32xf32>
    %cst_36 = arith.constant dense<0.000000e+00> : vector<3x32xf32>
    %50 = tpu.matmul %48, %49, %cst_36 {dimension_numbers = #tpu.dot_dimension_numbers<[1], [0], [0], [1], [0, 0, 1, 1], [], []>} : vector<3x32xf32>, vector<32x32xf32>, vector<3x32xf32> -> vector<3x32xf32>
    %51 = vector.extract_strided_slice %0 {offsets = [8, 0], sizes = [1, 32], strides = [1, 1]} : vector<16x32xf32> to vector<1x32xf32>
    %52 = vector.broadcast %51 : vector<1x32xf32> to vector<3x32xf32>
    %53 = arith.addf %50, %52 : vector<3x32xf32>
    %c88 = arith.constant 88 : index
    %c0_37 = arith.constant 0 : index
    %54 = vector.load %arg8[%c88, %c0_37] : memref<320x32xf32, #tpu.memory_space<vmem>>, vector<32x32xf32>
    %cst_38 = arith.constant dense<0.000000e+00> : vector<24x32xf32>
    %55 = tpu.matmul %40, %54, %cst_38 {dimension_numbers = #tpu.dot_dimension_numbers<[1], [0], [0], [1], [0, 0, 1, 1], [], []>} : vector<24x32xf32>, vector<32x32xf32>, vector<24x32xf32> -> vector<24x32xf32>
    %56 = vector.extract_strided_slice %0 {offsets = [4, 0], sizes = [1, 32], strides = [1, 1]} : vector<16x32xf32> to vector<1x32xf32>
    %57 = vector.broadcast %56 : vector<1x32xf32> to vector<24x32xf32>
    %58 = arith.addf %55, %57 : vector<24x32xf32>
    %cst_39 = arith.constant dense<0.000000e+00> : vector<24x32xf32>
    %59 = tpu.matmul %4, %58, %cst_39 {dimension_numbers = #tpu.dot_dimension_numbers<[1], [0], [0], [1], [0, 0, 1, 1], [], []>} : vector<24x24xf32>, vector<24x32xf32>, vector<24x32xf32> -> vector<24x32xf32>
    %60 = tpu.concatenate %59, %59, %59, %59, %59, %59, %59, %59 in 1 : vector<24x32xf32>, vector<24x32xf32>, vector<24x32xf32>, vector<24x32xf32>, vector<24x32xf32>, vector<24x32xf32>, vector<24x32xf32>, vector<24x32xf32> -> vector<24x256xf32>
    %61 = arith.mulf %60, %6 : vector<24x256xf32>
    %c1 = arith.constant 1 : index
    %c0_40 = arith.constant 0 : index
    %c0_41 = arith.constant 0 : index
    %62 = vector.load %arg3[%c1, %c0_40, %c0_41] : memref<2x256x32xf32, #tpu.memory_space<vmem>>, vector<1x256x32xf32>
    %63 = vector.shape_cast %62 : vector<1x256x32xf32> to vector<256x32xf32>
    %cst_42 = arith.constant dense<0.000000e+00> : vector<24x32xf32>
    %64 = tpu.matmul %61, %63, %cst_42 {dimension_numbers = #tpu.dot_dimension_numbers<[1], [0], [0], [1], [0, 0, 1, 1], [], []>} : vector<24x256xf32>, vector<256x32xf32>, vector<24x32xf32> -> vector<24x32xf32>
    %c120 = arith.constant 120 : index
    %c0_43 = arith.constant 0 : index
    %65 = vector.load %arg8[%c120, %c0_43] : memref<320x32xf32, #tpu.memory_space<vmem>>, vector<8x32xf32>
    %cst_44 = arith.constant dense<0.000000e+00> : vector<24x32xf32>
    %66 = tpu.matmul %3, %65, %cst_44 {dimension_numbers = #tpu.dot_dimension_numbers<[1], [0], [0], [1], [0, 0, 1, 1], [], []>} : vector<24x8xf32>, vector<8x32xf32>, vector<24x32xf32> -> vector<24x32xf32>
    %67 = vector.extract_strided_slice %0 {offsets = [5, 0], sizes = [1, 32], strides = [1, 1]} : vector<16x32xf32> to vector<1x32xf32>
    %68 = vector.broadcast %67 : vector<1x32xf32> to vector<24x32xf32>
    %69 = arith.addf %66, %68 : vector<24x32xf32>
    %cst_45 = arith.constant 0.000000e+00 : f32
    %70 = vector.broadcast %cst_45 : f32 to vector<24x32xf32>
    %71 = arith.maximumf %69, %70 : vector<24x32xf32>
    %c128 = arith.constant 128 : index
    %c0_46 = arith.constant 0 : index
    %72 = vector.load %arg8[%c128, %c0_46] : memref<320x32xf32, #tpu.memory_space<vmem>>, vector<32x32xf32>
    %cst_47 = arith.constant dense<0.000000e+00> : vector<24x32xf32>
    %73 = tpu.matmul %71, %72, %cst_47 {dimension_numbers = #tpu.dot_dimension_numbers<[1], [0], [0], [1], [0, 0, 1, 1], [], []>} : vector<24x32xf32>, vector<32x32xf32>, vector<24x32xf32> -> vector<24x32xf32>
    %74 = vector.extract_strided_slice %0 {offsets = [6, 0], sizes = [1, 32], strides = [1, 1]} : vector<16x32xf32> to vector<1x32xf32>
    %75 = vector.broadcast %74 : vector<1x32xf32> to vector<24x32xf32>
    %76 = arith.addf %73, %75 : vector<24x32xf32>
    %77 = arith.addf %64, %76 : vector<24x32xf32>
    %cst_48 = arith.constant dense<0.000000e+00> : vector<24x32xf32>
    %78 = tpu.matmul %5, %77, %cst_48 {dimension_numbers = #tpu.dot_dimension_numbers<[1], [0], [0], [1], [0, 0, 1, 1], [], []>} : vector<24x24xf32>, vector<24x32xf32>, vector<24x32xf32> -> vector<24x32xf32>
    %cst_49 = arith.constant 0.000000e+00 : f32
    %79 = vector.broadcast %cst_49 : f32 to vector<24x32xf32>
    %80 = arith.maximumf %78, %79 : vector<24x32xf32>
    %81 = arith.addf %80, %40 : vector<24x32xf32>
    %cst_50 = arith.constant dense<0.000000e+00> : vector<3x32xf32>
    %82 = tpu.matmul %7, %81, %cst_50 {dimension_numbers = #tpu.dot_dimension_numbers<[1], [0], [0], [1], [0, 0, 1, 1], [], []>} : vector<3x24xf32>, vector<24x32xf32>, vector<3x32xf32> -> vector<3x32xf32>
    %c160_51 = arith.constant 160 : index
    %c0_52 = arith.constant 0 : index
    %83 = vector.load %arg8[%c160_51, %c0_52] : memref<320x32xf32, #tpu.memory_space<vmem>>, vector<32x32xf32>
    %cst_53 = arith.constant dense<0.000000e+00> : vector<3x32xf32>
    %84 = tpu.matmul %82, %83, %cst_53 {dimension_numbers = #tpu.dot_dimension_numbers<[1], [0], [0], [1], [0, 0, 1, 1], [], []>} : vector<3x32xf32>, vector<32x32xf32>, vector<3x32xf32> -> vector<3x32xf32>
    %85 = vector.extract_strided_slice %0 {offsets = [7, 0], sizes = [1, 32], strides = [1, 1]} : vector<16x32xf32> to vector<1x32xf32>
    %86 = vector.broadcast %85 : vector<1x32xf32> to vector<3x32xf32>
    %87 = arith.addf %84, %86 : vector<3x32xf32>
    %cst_54 = arith.constant 0.000000e+00 : f32
    %88 = vector.broadcast %cst_54 : f32 to vector<3x32xf32>
    %89 = arith.maximumf %87, %88 : vector<3x32xf32>
    %c192_55 = arith.constant 192 : index
    %c0_56 = arith.constant 0 : index
    %90 = vector.load %arg8[%c192_55, %c0_56] : memref<320x32xf32, #tpu.memory_space<vmem>>, vector<32x32xf32>
    %cst_57 = arith.constant dense<0.000000e+00> : vector<3x32xf32>
    %91 = tpu.matmul %89, %90, %cst_57 {dimension_numbers = #tpu.dot_dimension_numbers<[1], [0], [0], [1], [0, 0, 1, 1], [], []>} : vector<3x32xf32>, vector<32x32xf32>, vector<3x32xf32> -> vector<3x32xf32>
    %92 = vector.extract_strided_slice %0 {offsets = [8, 0], sizes = [1, 32], strides = [1, 1]} : vector<16x32xf32> to vector<1x32xf32>
    %93 = vector.broadcast %92 : vector<1x32xf32> to vector<3x32xf32>
    %94 = arith.addf %91, %93 : vector<3x32xf32>
    %c0_58 = arith.constant 0 : index
    %c0_59 = arith.constant 0 : index
    %95 = vector.load %arg9[%c0_58, %c0_59] : memref<96x96xf32, #tpu.memory_space<vmem>>, vector<32x96xf32>
    %cst_60 = arith.constant dense<0.000000e+00> : vector<3x96xf32>
    %96 = tpu.matmul %94, %95, %cst_60 {dimension_numbers = #tpu.dot_dimension_numbers<[1], [0], [0], [1], [0, 0, 1, 1], [], []>} : vector<3x32xf32>, vector<32x96xf32>, vector<3x96xf32> -> vector<3x96xf32>
    %97 = vector.extract_strided_slice %1 {offsets = [0, 0], sizes = [1, 96], strides = [1, 1]} : vector<3x96xf32> to vector<1x96xf32>
    %98 = vector.broadcast %97 : vector<1x96xf32> to vector<3x96xf32>
    %99 = arith.addf %96, %98 : vector<3x96xf32>
    %c32 = arith.constant 32 : index
    %c0_61 = arith.constant 0 : index
    %100 = vector.load %arg9[%c32, %c0_61] : memref<96x96xf32, #tpu.memory_space<vmem>>, vector<32x96xf32>
    %cst_62 = arith.constant dense<0.000000e+00> : vector<3x96xf32>
    %101 = tpu.matmul %53, %100, %cst_62 {dimension_numbers = #tpu.dot_dimension_numbers<[1], [0], [0], [1], [0, 0, 1, 1], [], []>} : vector<3x32xf32>, vector<32x96xf32>, vector<3x96xf32> -> vector<3x96xf32>
    %102 = vector.extract_strided_slice %1 {offsets = [1, 0], sizes = [1, 96], strides = [1, 1]} : vector<3x96xf32> to vector<1x96xf32>
    %103 = vector.broadcast %102 : vector<1x96xf32> to vector<3x96xf32>
    %104 = arith.addf %101, %103 : vector<3x96xf32>
    %105 = vector.extract_strided_slice %99 {offsets = [0, 0], sizes = [3, 32], strides = [1, 1]} : vector<3x96xf32> to vector<3x32xf32>
    %106 = vector.extract_strided_slice %104 {offsets = [0, 0], sizes = [3, 32], strides = [1, 1]} : vector<3x96xf32> to vector<3x32xf32>
    %107 = arith.addf %105, %106 : vector<3x32xf32>
    %108 = arith.negf %107 : vector<3x32xf32>
    %109 = math.exp %108 : vector<3x32xf32>
    %cst_63 = arith.constant 1.000000e+00 : f32
    %110 = vector.broadcast %cst_63 : f32 to vector<3x32xf32>
    %111 = arith.addf %110, %109 : vector<3x32xf32>
    %112 = arith.divf %110, %111 : vector<3x32xf32>
    %113 = vector.extract_strided_slice %99 {offsets = [0, 32], sizes = [3, 32], strides = [1, 1]} : vector<3x96xf32> to vector<3x32xf32>
    %114 = vector.extract_strided_slice %104 {offsets = [0, 32], sizes = [3, 32], strides = [1, 1]} : vector<3x96xf32> to vector<3x32xf32>
    %115 = arith.addf %113, %114 : vector<3x32xf32>
    %116 = arith.negf %115 : vector<3x32xf32>
    %117 = math.exp %116 : vector<3x32xf32>
    %cst_64 = arith.constant 1.000000e+00 : f32
    %118 = vector.broadcast %cst_64 : f32 to vector<3x32xf32>
    %119 = arith.addf %118, %117 : vector<3x32xf32>
    %120 = arith.divf %118, %119 : vector<3x32xf32>
    %121 = vector.extract_strided_slice %99 {offsets = [0, 64], sizes = [3, 32], strides = [1, 1]} : vector<3x96xf32> to vector<3x32xf32>
    %122 = vector.extract_strided_slice %104 {offsets = [0, 64], sizes = [3, 32], strides = [1, 1]} : vector<3x96xf32> to vector<3x32xf32>
    %123 = arith.mulf %112, %122 : vector<3x32xf32>
    %124 = arith.addf %121, %123 : vector<3x32xf32>
    %125 = math.tanh %124 : vector<3x32xf32>
    %cst_65 = arith.constant 1.000000e+00 : f32
    %126 = vector.broadcast %cst_65 : f32 to vector<3x32xf32>
    %127 = arith.subf %126, %120 : vector<3x32xf32>
    %128 = arith.mulf %127, %125 : vector<3x32xf32>
    %129 = arith.mulf %120, %53 : vector<3x32xf32>
    %130 = arith.addf %128, %129 : vector<3x32xf32>
    %cst_66 = arith.constant dense<0.000000e+00> : vector<3xf32>
    %131 = vector.multi_reduction <add>, %130, %cst_66 [1] : vector<3x32xf32> to vector<3xf32>
    %132 = vector.shape_cast %131 : vector<3xf32> to vector<3x1xf32>
    %cst_67 = arith.constant 3.200000e+01 : f32
    %133 = vector.broadcast %cst_67 : f32 to vector<3x1xf32>
    %134 = arith.divf %132, %133 : vector<3x1xf32>
    %135 = vector.broadcast %134 : vector<3x1xf32> to vector<3x32xf32>
    %136 = arith.subf %130, %135 : vector<3x32xf32>
    %137 = arith.mulf %136, %136 : vector<3x32xf32>
    %cst_68 = arith.constant dense<0.000000e+00> : vector<3xf32>
    %138 = vector.multi_reduction <add>, %137, %cst_68 [1] : vector<3x32xf32> to vector<3xf32>
    %139 = vector.shape_cast %138 : vector<3xf32> to vector<3x1xf32>
    %cst_69 = arith.constant 3.200000e+01 : f32
    %140 = vector.broadcast %cst_69 : f32 to vector<3x1xf32>
    %141 = arith.divf %139, %140 : vector<3x1xf32>
    %142 = vector.broadcast %134 : vector<3x1xf32> to vector<3x32xf32>
    %143 = arith.subf %130, %142 : vector<3x32xf32>
    %cst_70 = arith.constant 9.99999974E-6 : f32
    %144 = vector.broadcast %cst_70 : f32 to vector<3x1xf32>
    %145 = arith.addf %141, %144 : vector<3x1xf32>
    %146 = math.rsqrt %145 : vector<3x1xf32>
    %147 = vector.broadcast %146 : vector<3x1xf32> to vector<3x32xf32>
    %148 = arith.mulf %143, %147 : vector<3x32xf32>
    %149 = vector.extract_strided_slice %0 {offsets = [12, 0], sizes = [1, 32], strides = [1, 1]} : vector<16x32xf32> to vector<1x32xf32>
    %150 = vector.broadcast %149 : vector<1x32xf32> to vector<3x32xf32>
    %151 = arith.mulf %148, %150 : vector<3x32xf32>
    %152 = vector.extract_strided_slice %0 {offsets = [13, 0], sizes = [1, 32], strides = [1, 1]} : vector<16x32xf32> to vector<1x32xf32>
    %153 = vector.broadcast %152 : vector<1x32xf32> to vector<3x32xf32>
    %154 = arith.addf %151, %153 : vector<3x32xf32>
    %c64 = arith.constant 64 : index
    %c0_71 = arith.constant 0 : index
    %155 = vector.load %arg9[%c64, %c0_71] : memref<96x96xf32, #tpu.memory_space<vmem>>, vector<32x96xf32>
    %cst_72 = arith.constant dense<0.000000e+00> : vector<3x96xf32>
    %156 = tpu.matmul %154, %155, %cst_72 {dimension_numbers = #tpu.dot_dimension_numbers<[1], [0], [0], [1], [0, 0, 1, 1], [], []>} : vector<3x32xf32>, vector<32x96xf32>, vector<3x96xf32> -> vector<3x96xf32>
    %157 = vector.extract_strided_slice %1 {offsets = [2, 0], sizes = [1, 96], strides = [1, 1]} : vector<3x96xf32> to vector<1x96xf32>
    %158 = vector.broadcast %157 : vector<1x96xf32> to vector<3x96xf32>
    %159 = arith.addf %156, %158 : vector<3x96xf32>
    %160 = vector.extract_strided_slice %159 {offsets = [0, 0], sizes = [3, 32], strides = [1, 1]} : vector<3x96xf32> to vector<3x32xf32>
    %161 = vector.extract_strided_slice %159 {offsets = [0, 32], sizes = [3, 32], strides = [1, 1]} : vector<3x96xf32> to vector<3x32xf32>
    %162 = vector.extract_strided_slice %159 {offsets = [0, 64], sizes = [3, 32], strides = [1, 1]} : vector<3x96xf32> to vector<3x32xf32>
    %163 = vector.extract_strided_slice %160 {offsets = [0, 0], sizes = [3, 8], strides = [1, 1]} : vector<3x32xf32> to vector<3x8xf32>
    %164 = vector.extract_strided_slice %161 {offsets = [0, 0], sizes = [3, 8], strides = [1, 1]} : vector<3x32xf32> to vector<3x8xf32>
    %165 = vector.extract_strided_slice %162 {offsets = [0, 0], sizes = [3, 8], strides = [1, 1]} : vector<3x32xf32> to vector<3x8xf32>
    %cst_73 = arith.constant dense<0.000000e+00> : vector<3x3xf32>
    %166 = tpu.matmul %163, %164, %cst_73 {dimension_numbers = #tpu.dot_dimension_numbers<[1], [1], [0], [0], [0, 0, 1, 0], [], []>} : vector<3x8xf32>, vector<3x8xf32>, vector<3x3xf32> -> vector<3x3xf32>
    %cst_74 = arith.constant 0.353553385 : f32
    %167 = vector.broadcast %cst_74 : f32 to vector<3x3xf32>
    %168 = arith.mulf %166, %167 : vector<3x3xf32>
    %cst_75 = arith.constant dense<0xFF800000> : vector<3xf32>
    %169 = vector.multi_reduction <maximumf>, %168, %cst_75 [1] : vector<3x3xf32> to vector<3xf32>
    %170 = vector.shape_cast %169 : vector<3xf32> to vector<3x1xf32>
    %171 = vector.broadcast %170 : vector<3x1xf32> to vector<3x3xf32>
    %172 = arith.subf %168, %171 : vector<3x3xf32>
    %173 = math.exp %172 : vector<3x3xf32>
    %cst_76 = arith.constant dense<0.000000e+00> : vector<3xf32>
    %174 = vector.multi_reduction <add>, %173, %cst_76 [1] : vector<3x3xf32> to vector<3xf32>
    %175 = vector.shape_cast %174 : vector<3xf32> to vector<3x1xf32>
    %176 = vector.broadcast %175 : vector<3x1xf32> to vector<3x3xf32>
    %177 = arith.divf %173, %176 : vector<3x3xf32>
    %cst_77 = arith.constant dense<0.000000e+00> : vector<3x8xf32>
    %178 = tpu.matmul %177, %165, %cst_77 {dimension_numbers = #tpu.dot_dimension_numbers<[1], [0], [0], [1], [0, 0, 1, 1], [], []>} : vector<3x3xf32>, vector<3x8xf32>, vector<3x8xf32> -> vector<3x8xf32>
    %179 = vector.extract_strided_slice %160 {offsets = [0, 8], sizes = [3, 8], strides = [1, 1]} : vector<3x32xf32> to vector<3x8xf32>
    %180 = vector.extract_strided_slice %161 {offsets = [0, 8], sizes = [3, 8], strides = [1, 1]} : vector<3x32xf32> to vector<3x8xf32>
    %181 = vector.extract_strided_slice %162 {offsets = [0, 8], sizes = [3, 8], strides = [1, 1]} : vector<3x32xf32> to vector<3x8xf32>
    %cst_78 = arith.constant dense<0.000000e+00> : vector<3x3xf32>
    %182 = tpu.matmul %179, %180, %cst_78 {dimension_numbers = #tpu.dot_dimension_numbers<[1], [1], [0], [0], [0, 0, 1, 0], [], []>} : vector<3x8xf32>, vector<3x8xf32>, vector<3x3xf32> -> vector<3x3xf32>
    %cst_79 = arith.constant 0.353553385 : f32
    %183 = vector.broadcast %cst_79 : f32 to vector<3x3xf32>
    %184 = arith.mulf %182, %183 : vector<3x3xf32>
    %cst_80 = arith.constant dense<0xFF800000> : vector<3xf32>
    %185 = vector.multi_reduction <maximumf>, %184, %cst_80 [1] : vector<3x3xf32> to vector<3xf32>
    %186 = vector.shape_cast %185 : vector<3xf32> to vector<3x1xf32>
    %187 = vector.broadcast %186 : vector<3x1xf32> to vector<3x3xf32>
    %188 = arith.subf %184, %187 : vector<3x3xf32>
    %189 = math.exp %188 : vector<3x3xf32>
    %cst_81 = arith.constant dense<0.000000e+00> : vector<3xf32>
    %190 = vector.multi_reduction <add>, %189, %cst_81 [1] : vector<3x3xf32> to vector<3xf32>
    %191 = vector.shape_cast %190 : vector<3xf32> to vector<3x1xf32>
    %192 = vector.broadcast %191 : vector<3x1xf32> to vector<3x3xf32>
    %193 = arith.divf %189, %192 : vector<3x3xf32>
    %cst_82 = arith.constant dense<0.000000e+00> : vector<3x8xf32>
    %194 = tpu.matmul %193, %181, %cst_82 {dimension_numbers = #tpu.dot_dimension_numbers<[1], [0], [0], [1], [0, 0, 1, 1], [], []>} : vector<3x3xf32>, vector<3x8xf32>, vector<3x8xf32> -> vector<3x8xf32>
    %195 = vector.extract_strided_slice %160 {offsets = [0, 16], sizes = [3, 8], strides = [1, 1]} : vector<3x32xf32> to vector<3x8xf32>
    %196 = vector.extract_strided_slice %161 {offsets = [0, 16], sizes = [3, 8], strides = [1, 1]} : vector<3x32xf32> to vector<3x8xf32>
    %197 = vector.extract_strided_slice %162 {offsets = [0, 16], sizes = [3, 8], strides = [1, 1]} : vector<3x32xf32> to vector<3x8xf32>
    %cst_83 = arith.constant dense<0.000000e+00> : vector<3x3xf32>
    %198 = tpu.matmul %195, %196, %cst_83 {dimension_numbers = #tpu.dot_dimension_numbers<[1], [1], [0], [0], [0, 0, 1, 0], [], []>} : vector<3x8xf32>, vector<3x8xf32>, vector<3x3xf32> -> vector<3x3xf32>
    %cst_84 = arith.constant 0.353553385 : f32
    %199 = vector.broadcast %cst_84 : f32 to vector<3x3xf32>
    %200 = arith.mulf %198, %199 : vector<3x3xf32>
    %cst_85 = arith.constant dense<0xFF800000> : vector<3xf32>
    %201 = vector.multi_reduction <maximumf>, %200, %cst_85 [1] : vector<3x3xf32> to vector<3xf32>
    %202 = vector.shape_cast %201 : vector<3xf32> to vector<3x1xf32>
    %203 = vector.broadcast %202 : vector<3x1xf32> to vector<3x3xf32>
    %204 = arith.subf %200, %203 : vector<3x3xf32>
    %205 = math.exp %204 : vector<3x3xf32>
    %cst_86 = arith.constant dense<0.000000e+00> : vector<3xf32>
    %206 = vector.multi_reduction <add>, %205, %cst_86 [1] : vector<3x3xf32> to vector<3xf32>
    %207 = vector.shape_cast %206 : vector<3xf32> to vector<3x1xf32>
    %208 = vector.broadcast %207 : vector<3x1xf32> to vector<3x3xf32>
    %209 = arith.divf %205, %208 : vector<3x3xf32>
    %cst_87 = arith.constant dense<0.000000e+00> : vector<3x8xf32>
    %210 = tpu.matmul %209, %197, %cst_87 {dimension_numbers = #tpu.dot_dimension_numbers<[1], [0], [0], [1], [0, 0, 1, 1], [], []>} : vector<3x3xf32>, vector<3x8xf32>, vector<3x8xf32> -> vector<3x8xf32>
    %211 = vector.extract_strided_slice %160 {offsets = [0, 24], sizes = [3, 8], strides = [1, 1]} : vector<3x32xf32> to vector<3x8xf32>
    %212 = vector.extract_strided_slice %161 {offsets = [0, 24], sizes = [3, 8], strides = [1, 1]} : vector<3x32xf32> to vector<3x8xf32>
    %213 = vector.extract_strided_slice %162 {offsets = [0, 24], sizes = [3, 8], strides = [1, 1]} : vector<3x32xf32> to vector<3x8xf32>
    %cst_88 = arith.constant dense<0.000000e+00> : vector<3x3xf32>
    %214 = tpu.matmul %211, %212, %cst_88 {dimension_numbers = #tpu.dot_dimension_numbers<[1], [1], [0], [0], [0, 0, 1, 0], [], []>} : vector<3x8xf32>, vector<3x8xf32>, vector<3x3xf32> -> vector<3x3xf32>
    %cst_89 = arith.constant 0.353553385 : f32
    %215 = vector.broadcast %cst_89 : f32 to vector<3x3xf32>
    %216 = arith.mulf %214, %215 : vector<3x3xf32>
    %cst_90 = arith.constant dense<0xFF800000> : vector<3xf32>
    %217 = vector.multi_reduction <maximumf>, %216, %cst_90 [1] : vector<3x3xf32> to vector<3xf32>
    %218 = vector.shape_cast %217 : vector<3xf32> to vector<3x1xf32>
    %219 = vector.broadcast %218 : vector<3x1xf32> to vector<3x3xf32>
    %220 = arith.subf %216, %219 : vector<3x3xf32>
    %221 = math.exp %220 : vector<3x3xf32>
    %cst_91 = arith.constant dense<0.000000e+00> : vector<3xf32>
    %222 = vector.multi_reduction <add>, %221, %cst_91 [1] : vector<3x3xf32> to vector<3xf32>
    %223 = vector.shape_cast %222 : vector<3xf32> to vector<3x1xf32>
    %224 = vector.broadcast %223 : vector<3x1xf32> to vector<3x3xf32>
    %225 = arith.divf %221, %224 : vector<3x3xf32>
    %cst_92 = arith.constant dense<0.000000e+00> : vector<3x8xf32>
    %226 = tpu.matmul %225, %213, %cst_92 {dimension_numbers = #tpu.dot_dimension_numbers<[1], [0], [0], [1], [0, 0, 1, 1], [], []>} : vector<3x3xf32>, vector<3x8xf32>, vector<3x8xf32> -> vector<3x8xf32>
    %227 = tpu.concatenate %178, %194, %210, %226 in 1 : vector<3x8xf32>, vector<3x8xf32>, vector<3x8xf32>, vector<3x8xf32> -> vector<3x32xf32>
    %c224 = arith.constant 224 : index
    %c0_93 = arith.constant 0 : index
    %228 = vector.load %arg8[%c224, %c0_93] : memref<320x32xf32, #tpu.memory_space<vmem>>, vector<32x32xf32>
    %cst_94 = arith.constant dense<0.000000e+00> : vector<3x32xf32>
    %229 = tpu.matmul %227, %228, %cst_94 {dimension_numbers = #tpu.dot_dimension_numbers<[1], [0], [0], [1], [0, 0, 1, 1], [], []>} : vector<3x32xf32>, vector<32x32xf32>, vector<3x32xf32> -> vector<3x32xf32>
    %230 = vector.extract_strided_slice %0 {offsets = [9, 0], sizes = [1, 32], strides = [1, 1]} : vector<16x32xf32> to vector<1x32xf32>
    %231 = vector.broadcast %230 : vector<1x32xf32> to vector<3x32xf32>
    %232 = arith.addf %229, %231 : vector<3x32xf32>
    %cst_95 = arith.constant dense<0.000000e+00> : vector<32xf32>
    %233 = vector.multi_reduction <add>, %232, %cst_95 [0] : vector<3x32xf32> to vector<32xf32>
    %234 = vector.shape_cast %233 : vector<32xf32> to vector<1x32xf32>
    %cst_96 = arith.constant 3.000000e+00 : f32
    %235 = vector.broadcast %cst_96 : f32 to vector<1x32xf32>
    %236 = arith.divf %234, %235 : vector<1x32xf32>
    %c256 = arith.constant 256 : index
    %c0_97 = arith.constant 0 : index
    %237 = vector.load %arg8[%c256, %c0_97] : memref<320x32xf32, #tpu.memory_space<vmem>>, vector<32x32xf32>
    %cst_98 = arith.constant dense<0.000000e+00> : vector<1x32xf32>
    %238 = tpu.matmul %236, %237, %cst_98 {dimension_numbers = #tpu.dot_dimension_numbers<[1], [0], [0], [1], [0, 0, 1, 1], [], []>} : vector<1x32xf32>, vector<32x32xf32>, vector<1x32xf32> -> vector<1x32xf32>
    %239 = vector.extract_strided_slice %0 {offsets = [10, 0], sizes = [1, 32], strides = [1, 1]} : vector<16x32xf32> to vector<1x32xf32>
    %240 = arith.addf %238, %239 : vector<1x32xf32>
    %cst_99 = arith.constant 0.000000e+00 : f32
    %241 = vector.broadcast %cst_99 : f32 to vector<1x32xf32>
    %242 = arith.maximumf %240, %241 : vector<1x32xf32>
    %c288 = arith.constant 288 : index
    %c0_100 = arith.constant 0 : index
    %243 = vector.load %arg8[%c288, %c0_100] : memref<320x32xf32, #tpu.memory_space<vmem>>, vector<32x32xf32>
    %cst_101 = arith.constant dense<0.000000e+00> : vector<1x32xf32>
    %244 = tpu.matmul %242, %243, %cst_101 {dimension_numbers = #tpu.dot_dimension_numbers<[1], [0], [0], [1], [0, 0, 1, 1], [], []>} : vector<1x32xf32>, vector<32x32xf32>, vector<1x32xf32> -> vector<1x32xf32>
    %245 = vector.extract_strided_slice %0 {offsets = [11, 0], sizes = [1, 32], strides = [1, 1]} : vector<16x32xf32> to vector<1x32xf32>
    %246 = arith.addf %244, %245 : vector<1x32xf32>
    %cst_102 = arith.constant dense<0.000000e+00> : vector<1xf32>
    %247 = vector.multi_reduction <add>, %246, %cst_102 [1] : vector<1x32xf32> to vector<1xf32>
    %248 = vector.shape_cast %247 : vector<1xf32> to vector<1x1xf32>
    %cst_103 = arith.constant 3.200000e+01 : f32
    %249 = vector.broadcast %cst_103 : f32 to vector<1x1xf32>
    %250 = arith.divf %248, %249 : vector<1x1xf32>
    %251 = vector.broadcast %250 : vector<1x1xf32> to vector<1x32xf32>
    %252 = arith.subf %246, %251 : vector<1x32xf32>
    %253 = arith.mulf %252, %252 : vector<1x32xf32>
    %cst_104 = arith.constant dense<0.000000e+00> : vector<1xf32>
    %254 = vector.multi_reduction <add>, %253, %cst_104 [1] : vector<1x32xf32> to vector<1xf32>
    %255 = vector.shape_cast %254 : vector<1xf32> to vector<1x1xf32>
    %cst_105 = arith.constant 3.200000e+01 : f32
    %256 = vector.broadcast %cst_105 : f32 to vector<1x1xf32>
    %257 = arith.divf %255, %256 : vector<1x1xf32>
    %258 = vector.broadcast %250 : vector<1x1xf32> to vector<1x32xf32>
    %259 = arith.subf %246, %258 : vector<1x32xf32>
    %cst_106 = arith.constant 9.99999974E-6 : f32
    %260 = vector.broadcast %cst_106 : f32 to vector<1x1xf32>
    %261 = arith.addf %257, %260 : vector<1x1xf32>
    %262 = math.rsqrt %261 : vector<1x1xf32>
    %263 = vector.broadcast %262 : vector<1x1xf32> to vector<1x32xf32>
    %264 = arith.mulf %259, %263 : vector<1x32xf32>
    %265 = vector.extract_strided_slice %0 {offsets = [14, 0], sizes = [1, 32], strides = [1, 1]} : vector<16x32xf32> to vector<1x32xf32>
    %266 = arith.mulf %264, %265 : vector<1x32xf32>
    %267 = vector.extract_strided_slice %0 {offsets = [15, 0], sizes = [1, 32], strides = [1, 1]} : vector<16x32xf32> to vector<1x32xf32>
    %268 = arith.addf %266, %267 : vector<1x32xf32>
    %c0_107 = arith.constant 0 : index
    %c0_108 = arith.constant 0 : index
    %269 = vector.load %arg12[%c0_107, %c0_108] : memref<1x32xf32, #tpu.memory_space<vmem>>, vector<1x32xf32>
    tpu.vector_store %arg12[%c0_107, %c0_108], %268 {strides = array<i32>} : memref<1x32xf32, #tpu.memory_space<vmem>>, vector<1x32xf32>,
    return
  }
  func.func @transform_0(%arg0: i32) -> (i32, i32) {
    %c0_i32 = arith.constant 0 : i32
    %c0_i32_0 = arith.constant 0 : i32
    %c0_i32_1 = arith.constant 0 : i32
    return %c0_i32, %c0_i32_0 : i32, i32
  }
  func.func @transform_1(%arg0: i32) -> (i32, i32) {
    %c0_i32 = arith.constant 0 : i32
    %c0_i32_0 = arith.constant 0 : i32
    %c0_i32_1 = arith.constant 0 : i32
    return %c0_i32, %c0_i32_0 : i32, i32
  }
  func.func @transform_2(%arg0: i32) -> (i32, i32, i32) {
    %c0_i32 = arith.constant 0 : i32
    %c0_i32_0 = arith.constant 0 : i32
    %c0_i32_1 = arith.constant 0 : i32
    %c0_i32_2 = arith.constant 0 : i32
    return %c0_i32, %c0_i32_0, %c0_i32_1 : i32, i32, i32
  }
  func.func @transform_3(%arg0: i32) -> (i32, i32) {
    %c0_i32 = arith.constant 0 : i32
    %c0_i32_0 = arith.constant 0 : i32
    %c0_i32_1 = arith.constant 0 : i32
    return %c0_i32, %c0_i32_0 : i32, i32
  }
  func.func @transform_4(%arg0: i32) -> (i32, i32) {
    %c0_i32 = arith.constant 0 : i32
    %c0_i32_0 = arith.constant 0 : i32
    %c0_i32_1 = arith.constant 0 : i32
    return %c0_i32, %c0_i32_0 : i32, i32
  }
  func.func @transform_5(%arg0: i32) -> (i32, i32) {
    %c0_i32 = arith.constant 0 : i32
    %c0_i32_0 = arith.constant 0 : i32
    %c0_i32_1 = arith.constant 0 : i32
    return %c0_i32, %c0_i32_0 : i32, i32
  }
  func.func @transform_6(%arg0: i32) -> (i32, i32) {
    %c0_i32 = arith.constant 0 : i32
    %c0_i32_0 = arith.constant 0 : i32
    %c0_i32_1 = arith.constant 0 : i32
    return %c0_i32, %c0_i32_0 : i32, i32
  }
  func.func @transform_7(%arg0: i32) -> (i32, i32) {
    %c0_i32 = arith.constant 0 : i32
    %c0_i32_0 = arith.constant 0 : i32
    %c0_i32_1 = arith.constant 0 : i32
    return %c0_i32, %c0_i32_0 : i32, i32
  }
  func.func @transform_8(%arg0: i32) -> (i32, i32) {
    %c0_i32 = arith.constant 0 : i32
    %c0_i32_0 = arith.constant 0 : i32
    %c0_i32_1 = arith.constant 0 : i32
    return %c0_i32, %c0_i32_0 : i32, i32
  }
  func.func @transform_9(%arg0: i32) -> (i32, i32) {
    %c0_i32 = arith.constant 0 : i32
    %c0_i32_0 = arith.constant 0 : i32
    %c0_i32_1 = arith.constant 0 : i32
    return %c0_i32, %c0_i32_0 : i32, i32
  }
  func.func @transform_10(%arg0: i32) -> (i32, i32) {
    %c0_i32 = arith.constant 0 : i32
    %c0_i32_0 = arith.constant 0 : i32
    %c0_i32_1 = arith.constant 0 : i32
    return %c0_i32, %c0_i32_0 : i32, i32
  }
  func.func @transform_11(%arg0: i32) -> (i32, i32) {
    %c0_i32 = arith.constant 0 : i32
    %c0_i32_0 = arith.constant 0 : i32
    %c0_i32_1 = arith.constant 0 : i32
    return %c0_i32, %c0_i32_0 : i32, i32
  }
}

</mosaic_0001>

<bundles_post_ra>
// kernel: eq.38
= control target key start
LH: loop header
LB: loop body
LE: loop exit
PB: predicated region body
PF: predicated region fallthrough
CT: control target
= control target key end

     0   :  { %vm8_vm0 = vcmask 64512   ;;  %s33_s8 = smov 8   ;;  %vm14_vm1 = vcmask 195712   ;;  %vm20_vm2 = vcmask 130112   ;;  %s50_s0 = inlined_call_operand.vmem [shape: s32[3,8], index: 0, kind: input, shape index: {}]   ;;  %s51_s1 = inlined_call_operand.vmem [shape: s32[24], index: 1, kind: output, shape index: {}]  }
   0x1   :  { %v5_v0 = vld [vmem:[%s50_s0] sm:$0xf]  ;;  %s32_s0 = smov 16  }
   0x2   :  { %6 = vst [vmem:[#allocation1] sm:$0xf] %v5_v0 }
   0x9   :  { %v11_v1 = vld [vmem:[#allocation1 + $0x2] sm:$0x1]   ;;  %v7_v2 = vld [vmem:[#allocation1] sm:$0x1]   ;;  %v17_v3 = vld [vmem:[#allocation1 + $0x1] sm:$0x1]  }
   0xa   :  { %12 = vrot.lane.b32.xlu0 %v11_v1, %s32_s0  ;;  %9 = vst.msk [vmem:[#allocation0] sm:$0x1] %vm8_vm0, %v7_v2  }
   0xe   :  { %18 = vrot.lane.b32.xlu0 %v17_v3, %s33_s8 }
  0x7c   :  { %v13_v4 = vpop.permute.xlu0 %12  }
  0x7d   :  { %15 = vst.msk [vmem:[#allocation0] sm:$0x1] %vm14_vm1, %v13_v4  }
  0x80   :  { %v19_v5 = vpop.permute.xlu0 %18  }
  0x81   :  { %21 = vst.msk [vmem:[#allocation0] sm:$0x1] %vm20_vm2, %v19_v5  }
  0x88   :  { %v26_v6 = vld [vmem:[#allocation0] sm:$0x1] }
  0x89   :  { %29 = vst [vmem:[%s51_s1] sm:$0x1] %v26_v6 }

// kernel: model_embedder_forward.1
= control target key start
LH: loop header
LB: loop body
LE: loop exit
PB: predicated region body
PF: predicated region fallthrough
CT: control target
= control target key end

     0   :  { %v3857_v1 = vmov 0.0   ;;  %vm3858_vm0 = vmmov 0   ;;  %vm67_vm1 = vcmask 130048   ;;  %s4875_s0 = inlined_call_operand.vmem [shape: f32[24,16], index: 0, kind: input, shape index: {}]   ;;  %s4876_s1 = inlined_call_operand.vmem [shape: f32[24,8], index: 1, kind: input, shape index: {}]   ;;  %s4877_s2 = inlined_call_operand.vmem [shape: f32[2,256,32], index: 2, kind: input, shape index: {}]   ;;  %s4878_s3 = inlined_call_operand.vmem [shape: f32[24,24], index: 3, kind: input, shape index: {}]   ;;  %s4879_s4 = inlined_call_operand.vmem [shape: f32[24,24], index: 4, kind: input, shape index: {}]   ;;  %s4880_s5 = inlined_call_operand.vmem [shape: f32[24,256], index: 5, kind: input, shape index: {}]   ;;  %s4881_s6 = inlined_call_operand.vmem [shape: f32[3,24], index: 6, kind: input, shape index: {}]   ;;  %s4882_s7 = inlined_call_operand.vmem [shape: f32[320,32], index: 7, kind: input, shape index: {}]   ;;  %s4883_s8 = inlined_call_operand.vmem [shape: f32[96,96], index: 8, kind: input, shape index: {}]   ;;  %s4884_s9 = inlined_call_operand.vmem [shape: f32[16,32], index: 9, kind: input, shape index: {}]   ;;  %s4885_s10 = inlined_call_operand.vmem [shape: f32[3,96], index: 10, kind: input, shape index: {}]   ;;  %s4886_s11 = inlined_call_operand.hbm [shape: f32[1,32], index: 11, kind: output, shape index: {}]  }
   0x1   :  { %v62_v0 = vld [vmem:[%s4882_s7 + $0x8] sm:$0xff]  ;;  %3453 = vmatprep.subr.mxu0 %v3857_v1  ;;  %v61_v2 = vld [vmem:[%s4882_s7] sm:$0xff]  ;;  %3457 = vmatprep.mubr.msk.f32.mxu0 %vm3858_vm0, %v3857_v1 }
   0x2   :  { %v160_v3 = vld [vmem:[%s4882_s7 + $0x28] sm:$0xff]  ;;  %3454 = vmatpush3.msra.mxu0 %v62_v0  ;;  %v42_v4 = vld [vmem:[%s4875_s0] sm:$0xff]  ;;  %3466 = vmatprep.subr.mxu1 %v3857_v1 }
   0x3   :  { %v159_v5 = vld [vmem:[%s4882_s7 + $0x20] sm:$0xff] }
   0x4   :  { %16 = vsyncpa [#allocation3], 0  ;;  %3455 = vmatprep.subr.mxu0 %v3857_v1  ;;  %3467 = vmatpush3.msra.mxu1 %v160_v3  ;;  %v43_v6 = vld [vmem:[%s4875_s0 + $0x8] sm:$0xff]  ;;  %v44_v7 = vld [vmem:[%s4875_s0 + $0x10] sm:$0xff]  ;;  %v63_v10 = vlaneseq  ;;  %vm165_vm2 = vcmask 261120   ;;  %vm429_vm3 = vcmask 64512  }
   0x5   :  { %3456 = vmatpush3.msra.mxu0 %v61_v2  ;;  %3468 = vmatprep.subr.mxu1 %v3857_v1  ;;  %v158_v8 = vld [vmem:[%s4882_s7 + $0x18] sm:$0xff]  ;;  %v157_v9 = vld [vmem:[%s4882_s7 + $0x10] sm:$0xff]  ;;  %v3991_v13 = vld [vmem:[%s4884_s9] sm:$0xff]  ;;  %vm255_vm4 = vcmask 195584   ;;  %s3860_s16 = smov 32   ;;  %s3861_s17 = smov 64  }
   0x6   :  { %3458 = vmatmul.mubr.msk.f32.vlgmr.msra.gmra.mxu0 %vm67_vm1, %v42_v4  ;;  %3469 = vmatpush3.msra.mxu1 %v159_v5  ;;  %v3983_v11 = vshrl.u32 %v63_v10, 7  ;;  %v424_v24 = vld [vmem:[%s4882_s7 + $0x30] sm:$0xff]  ;;  %v4019_v25 = vld [vmem:[%s4876_s1] sm:$0xff]  ;;  %v4028_v26 = vld [vmem:[%s4876_s1 + $0x8] sm:$0xff]  ;;  %vm378_vm5 = vcmask 523264   ;;  %vm382_vm6 = vcmask 785408  }
   0x7   :  { %3460 = vmatprep.mubr.msk.f32.mxu0 %vm3858_vm0, %v3857_v1  ;;  %3470 = vmatprep.subr.mxu1 %v3857_v1  ;;  %v4037_v27 = vld [vmem:[%s4876_s1 + $0x10] sm:$0xff]  ;;  %v4050_v39 = vld [vmem:[%s4878_s3] sm:$0xff]  ;;  %v4061_v40 = vld [vmem:[%s4878_s3 + $0x8] sm:$0xff]  ;;  %vm2048_vm7 = vcmask 256000   ;;  %s3863_s28 = smov 80   ;;  %s3865_s29 = smov 72  }
   0x8   :  { %3474 = vmatprep.mubr.msk.f32.mxu1 %vm3858_vm0, %v3857_v1  ;;  %3483 = vmatprep.subr.mxu0 %v3857_v1  ;;  %v3986_v12 = vsub.s32 0, %v3983_v11  ;;  %v4042_v30 = vsub.s32 1, %v3983_v11  ;;  %v4070_v41 = vld [vmem:[%s4878_s3 + $0x10] sm:$0xff]  ;;  %v423_v42 = vld [vmem:[%s4877_s2 + $0xf8] sm:$0xff]  ;;  %v421_v46 = vld [vmem:[%s4877_s2 + $0xe8] sm:$0xff]  ;;  %s3859_s3 = smov 96  }
   0x9   :  { %3471 = vmatpush3.msra.mxu1 %v158_v8  ;;  %v407_v43 = vld [vmem:[%s4877_s2 + $0x78] sm:$0xff]  ;;  %v422_v44 = vld [vmem:[%s4877_s2 + $0xf0] sm:$0xff]  ;;  %v405_v47 = vld [vmem:[%s4877_s2 + $0x68] sm:$0xff]  ;;  %v427_v8 = vsub.s32 2, %v3983_v11  ;;  %s3866_s30 = smov 112   ;;  %s3867_s12 = smov 104  }
   0xa   :  { %3461 = vmatmul.mubr.msk.f32.gmra.mxu0 %vm67_vm1, %v43_v6  ;;  %3472 = vmatprep.subr.mxu1 %v3857_v1  ;;  %v66_v14 = vrot.slane %v3991_v13, %v3986_v12  ;;  %v164_v33 = vrot.slane %v3991_v13, %v4042_v30  ;;  %v406_v45 = vld [vmem:[%s4877_s2 + $0x70] sm:$0xff]  ;;  %v420_v48 = vld [vmem:[%s4877_s2 + $0xe0] sm:$0xff]  ;;  %v419_v50 = vld [vmem:[%s4877_s2 + $0xd8] sm:$0xff]  ;;  %vm2246_vm8 = vcmask 18432   ;;  %vm2264_vm9 = vcmask 1042432   ;;  %s3870_s13 = smov 56  }
   0xb   :  { %3463 = vmatprep.mubr.msk.f32.mxu0 %vm3858_vm0, %v3857_v1  ;;  %3473 = vmatpush3.msra.mxu1 %v157_v9  ;;  %v404_v49 = vld [vmem:[%s4877_s2 + $0x60] sm:$0xff]  ;;  %v403_v51 = vld [vmem:[%s4877_s2 + $0x58] sm:$0xff]  ;;  %v418_v52 = vld [vmem:[%s4877_s2 + $0xd0] sm:$0xff]  ;;  %v428_v10 = vrot.slane %v3991_v13, %v427_v8  ;;  %vm2260_vm10 = vcmask 23552   ;;  %s3872_s21 = smov 16   ;;  %s3873_s22 = smov 24  }
   0xc   :  { %3498 = vmatprep.subr.mxu1 %v3857_v1  ;;  %v402_v53 = vld [vmem:[%s4877_s2 + $0x50] sm:$0xff]  ;;  %v417_v54 = vld [vmem:[%s4877_s2 + $0xc8] sm:$0xff]  ;;  %v416_v56 = vld [vmem:[%s4877_s2 + $0xc0] sm:$0xff]  ;;  %vm3103_vm11 = vcmask 253952  }
   0xd   :  { %v401_v55 = vld [vmem:[%s4877_s2 + $0x48] sm:$0xff]  ;;  %v400_v57 = vld [vmem:[%s4877_s2 + $0x40] sm:$0xff]  ;;  %v415_v58 = vld [vmem:[%s4877_s2 + $0xb8] sm:$0xff] }
   0xe   :  { %3464 = vmatmul.mubr.msk.f32.gmra.mxu0 %vm67_vm1, %v44_v7  ;;  %v399_v59 = vld [vmem:[%s4877_s2 + $0x38] sm:$0xff]  ;;  %v414_v60 = vld [vmem:[%s4877_s2 + $0xb0] sm:$0xff]  ;;  %v413_v62 = vld [vmem:[%s4877_s2 + $0xa8] sm:$0xff] }
   0xf   :  { %3489 = vmatprep.mubr.msk.f32.mxu0 %vm3858_vm0, %v3857_v1  ;;  %v398_v61 = vld [vmem:[%s4877_s2 + $0x30] sm:$0xff]  ;;  %v397_v63 = vld [vmem:[%s4877_s2 + $0x28] sm:$0xff]  ;;  %v412_v0 = vld [vmem:[%s4877_s2 + $0xa0] sm:$0xff] }
  0x10   :  { %v396_v2 = vld [vmem:[%s4877_s2 + $0x20] sm:$0xff]  ;;  %v411_v3 = vld [vmem:[%s4877_s2 + $0x98] sm:$0xff]  ;;  %v410_v5 = vld [vmem:[%s4877_s2 + $0x90] sm:$0xff] }
  0x11   :  { %v395_v4 = vld [vmem:[%s4877_s2 + $0x18] sm:$0xff]  ;;  %v525_v6 = vld [vmem:[%s4882_s7 + $0x50] sm:$0xff]  ;;  %v409_v9 = vld [vmem:[%s4877_s2 + $0x88] sm:$0xff] }
  0x12   :  { %v394_v7 = vld [vmem:[%s4877_s2 + $0x10] sm:$0xff] }
  0xc6   :  { %v143_v15 = vpop.f32.mrf.mxu0 }
  0xc7   :  { %v3995_v16 = vadd.f32 %v143_v15, %v66_v14  ;;  %v393_v15 = vld [vmem:[%s4877_s2 + $0x8] sm:$0xff] }
  0xc8   :  { %v3459_v17 = vpop.f32.mrf.mxu0 }
  0xc9   :  { %3475 = vmatmul.mubr.msk.f32.vlgmr.msra.gmra.mxu1 %vm165_vm2, %v3995_v16 }
  0xca   :  { %v148_v18 = vpop.f32.mrf.mxu0  ;;  %3477 = vmatprep.mubr.msk.f32.mxu1 %vm3858_vm0, %v3857_v1  ;;  %3499 = vmatpush3.msra.mxu1 %v424_v24 }
  0xcb   :  { %v4001_v19 = vadd.f32 %v148_v18, %v66_v14  ;;  %3261 = vmatprep.subr.mxu1 %v423_v42  ;;  %v408_v18 = vld [vmem:[%s4877_s2 + $0x80] sm:$0xff] }
  0xcc   :  { %v3462_v20 = vpop.f32.mrf.mxu0 }
  0xcd   :  { %3478 = vmatmul.mubr.msk.f32.gmra.mxu1 %vm165_vm2, %v4001_v19 }
  0xce   :  { %v153_v21 = vpop.f32.mrf.mxu0  ;;  %3480 = vmatprep.mubr.msk.f32.mxu1 %vm3858_vm0, %v3857_v1 }
  0xcf   :  { %v4007_v22 = vadd.f32 %v153_v21, %v66_v14  ;;  %v524_v14 = vld [vmem:[%s4882_s7 + $0x48] sm:$0xff]  ;;  %v523_v21 = vld [vmem:[%s4882_s7 + $0x40] sm:$0xff] }
  0xd0   :  { %v3465_v23 = vpop.f32.mrf.mxu0 }
  0xd1   :  { %3481 = vmatmul.mubr.msk.f32.gmra.mxu1 %vm165_vm2, %v4007_v22  ;;  %v392_v23 = vld [vmem:[%s4877_s2] sm:$0xff] }
  0xd2   :  { %3500 = vmatprep.mubr.msk.f32.mxu1 %vm3858_vm0, %v3857_v1 }
  0xd5   :  { %3501 = vmatmul.mubr.msk.f32.vlgmr.msra.gmra.mxu1 %vm429_vm3, %v4019_v25 }
  0xd6   :  { %3503 = vmatprep.mubr.msk.f32.mxu1 %vm3858_vm0, %v3857_v1  ;;  %3262 = vmatpush3.msra.mxu1 %v407_v43 }
  0xd7   :  { %3263 = vmatprep.subr.mxu1 %v422_v44 }
  0xd8   :  { %3264 = vmatpush3.msra.mxu1 %v406_v45 }
  0xd9   :  { %3504 = vmatmul.mubr.msk.f32.gmra.mxu1 %vm429_vm3, %v4028_v26  ;;  %3265 = vmatprep.subr.mxu1 %v421_v46 }
  0xda   :  { %3506 = vmatprep.mubr.msk.f32.mxu1 %vm3858_vm0, %v3857_v1  ;;  %3266 = vmatpush3.msra.mxu1 %v405_v47 }
  0xdb   :  { %3267 = vmatprep.subr.mxu1 %v420_v48 }
  0xdc   :  { %3268 = vmatpush3.msra.mxu1 %v404_v49 }
  0xdd   :  { %3507 = vmatmul.mubr.msk.f32.gmra.mxu1 %vm429_vm3, %v4037_v27  ;;  %3269 = vmatprep.subr.mxu1 %v419_v50 }
  0xde   :  { %3270 = vmatpush3.msra.mxu1 %v403_v51  ;;  %v4215_v51 = vld [vmem:[%s4880_s5] sm:$0xff] }
  0xdf   :  { %3271 = vmatprep.subr.mxu1 %v418_v52 }
  0xe0   :  { %3272 = vmatpush3.msra.mxu1 %v402_v53 }
  0xe1   :  { %3273 = vmatprep.subr.mxu1 %v417_v54  ;;  %v4220_v54 = vld [vmem:[%s4880_s5 + $0x8] sm:$0xff] }
  0xe2   :  { %3274 = vmatpush3.msra.mxu1 %v401_v55 }
  0xe3   :  { %3275 = vmatprep.subr.mxu1 %v416_v56 }
  0xe4   :  { %3276 = vmatpush3.msra.mxu1 %v400_v57 }
  0xe5   :  { %3277 = vmatprep.subr.mxu1 %v415_v58 }
  0xe6   :  { %3278 = vmatpush3.msra.mxu1 %v399_v59 }
  0xe7   :  { %3279 = vmatprep.subr.mxu1 %v414_v60 }
  0xe8   :  { %3280 = vmatpush3.msra.mxu1 %v398_v61  ;;  %v4230_v61 = vld [vmem:[%s4880_s5 + $0x10] sm:$0xff] }
  0xe9   :  { %3281 = vmatprep.subr.mxu1 %v413_v62  ;;  %v4235_v62 = vld [vmem:[%s4880_s5 + $0x18] sm:$0xff] }
  0xea   :  { %3282 = vmatpush3.msra.mxu1 %v397_v63 }
  0xeb   :  { %3283 = vmatprep.subr.mxu1 %v412_v0 }
  0xec   :  { %3284 = vmatpush3.msra.mxu1 %v396_v2 }
  0xed   :  { %3285 = vmatprep.subr.mxu1 %v411_v3 }
  0xee   :  { %3286 = vmatpush3.msra.mxu1 %v395_v4 }
  0xef   :  { %3287 = vmatprep.subr.mxu1 %v410_v5 }
  0xf0   :  { %3288 = vmatpush3.msra.mxu1 %v394_v7 }
  0xf1   :  { %3289 = vmatprep.subr.mxu1 %v409_v9  ;;  %v4245_v9 = vld [vmem:[%s4880_s5 + $0x20] sm:$0xff] }
  0xf2   :  { %3290 = vmatpush3.msra.mxu1 %v393_v15 }
  0xf3   :  { %3291 = vmatprep.subr.mxu1 %v408_v18 }
  0xf4   :  { %3292 = vmatpush3.msra.mxu1 %v392_v23 }
  0xf5   :  { %3561 = vmatprep.subr.mxu1 %v3857_v1 }
 0x189   :  { %v241_v28 = vpop.f32.mrf.mxu1 }
 0x18a   :  { %v242_v38 = vadd.f32 %v241_v28, %v164_v33 }
 0x18b   :  { %v3476_v29 = vpop.f32.mrf.mxu1 }
 0x18c   :  { %v522_v29 = vld [vmem:[%s4882_s7 + $0x38] sm:$0xff] }
 0x18d   :  { %v246_v31 = vpop.f32.mrf.mxu1 }
 0x18e   :  { %v247_v37 = vadd.f32 %v246_v31, %v164_v33 }
 0x18f   :  { %v3479_v32 = vpop.f32.mrf.mxu1 }
 0x191   :  { %v251_v34 = vpop.f32.mrf.mxu1 }
 0x192   :  { %v252_v35 = vadd.f32 %v251_v34, %v164_v33 }
 0x193   :  { %v3482_v36 = vpop.f32.mrf.mxu1 }
 0x194   :  { %3484 = vmatpush3.msra.mxu0 %v252_v35 }
 0x195   :  { %3485 = vmatprep.subr.mxu0 %v3857_v1  ;;  %v505_v17 = vpop.f32.mrf.mxu1 }
 0x196   :  { %3486 = vmatpush3.msra.mxu0 %v247_v37  ;;  %v506_v20 = vadd.f32 %v505_v17, %v428_v10 }
 0x197   :  { %3487 = vmatprep.subr.mxu0 %v3857_v1  ;;  %v3502_v24 = vpop.f32.mrf.mxu1 }
 0x198   :  { %3488 = vmatpush3.msra.mxu0 %v242_v38  ;;  %v519_v28 = vmax.f32 %v506_v20, 0.0 }
 0x199   :  { %3490 = vmatmul.mubr.msk.f32.vlgmr.msra.gmra.mxu0 %vm255_vm4, %v4050_v39  ;;  %3509 = vmatprep.subr.mxu0 %v3857_v1  ;;  %v510_v31 = vpop.f32.mrf.mxu1 }
 0x19a   :  { %3492 = vmatprep.mubr.msk.f32.mxu0 %vm3858_vm0, %v3857_v1  ;;  %3510 = vmatpush3.msra.mxu0 %v525_v6  ;;  %v511_v32 = vadd.f32 %v510_v31, %v428_v10 }
 0x19b   :  { %3511 = vmatprep.subr.mxu0 %v3857_v1  ;;  %v3505_v34 = vpop.f32.mrf.mxu1 }
 0x19c   :  { %3512 = vmatpush3.msra.mxu0 %v524_v14  ;;  %v520_v35 = vmax.f32 %v511_v32, 0.0 }
 0x19d   :  { %3493 = vmatmul.mubr.msk.f32.gmra.mxu0 %vm255_vm4, %v4061_v40  ;;  %3513 = vmatprep.subr.mxu0 %v3857_v1  ;;  %v515_v37 = vpop.f32.mrf.mxu1 }
 0x19e   :  { %3495 = vmatprep.mubr.msk.f32.mxu0 %vm3858_vm0, %v3857_v1  ;;  %3514 = vmatpush3.msra.mxu0 %v523_v21  ;;  %v516_v42 = vadd.f32 %v515_v37, %v428_v10  ;;  %v4250_v10 = vld [vmem:[%s4880_s5 + $0x28] sm:$0xff]  ;;  %s3864_s5 = smov 120  }
 0x19f   :  { %3515 = vmatprep.subr.mxu0 %v3857_v1  ;;  %v3508_v43 = vpop.f32.mrf.mxu1 }
 0x1a0   :  { %3516 = vmatpush3.msra.mxu0 %v522_v29  ;;  %v521_v45 = vmax.f32 %v516_v42, 0.0 }
 0x1a1   :  { %3496 = vmatmul.mubr.msk.f32.gmra.mxu0 %vm255_vm4, %v4070_v41  ;;  %3526 = vmatprep.subr.mxu0 %v3857_v1 }
 0x1a2   :  { %3517 = vmatprep.mubr.msk.f32.mxu0 %vm3858_vm0, %v3857_v1 }
 0x1a5   :  { %3518 = vmatmul.mubr.msk.f32.vlgmr.msra.gmra.mxu0 %vm165_vm2, %v519_v28 }
 0x1a6   :  { %3520 = vmatprep.mubr.msk.f32.mxu0 %vm3858_vm0, %v3857_v1 }
 0x1a9   :  { %3521 = vmatmul.mubr.msk.f32.gmra.mxu0 %vm165_vm2, %v520_v35  ;;  %v528_v35 = vsub.s32 3, %v3983_v11 }
 0x1aa   :  { %3523 = vmatprep.mubr.msk.f32.mxu0 %vm3858_vm0, %v3857_v1 }
 0x1ab   :  { %v529_v37 = vrot.slane %v3991_v13, %v528_v35 }
 0x1ad   :  { %3524 = vmatmul.mubr.msk.f32.gmra.mxu0 %vm165_vm2, %v521_v45 }
 0x1ae   :  { %3532 = vmatprep.mubr.msk.f32.mxu0 %vm3858_vm0, %v3857_v1 }
 0x259   :  { %v331_v33 = vpop.f32.mrf.mxu0 }
 0x25a   :  { %366 = vrot.lane.b32.xlu1 %v331_v33, %s3859_s3  ;;  %348 = vrot.lane.b32.xlu0 %v331_v33, %s3860_s16 }
 0x25b   :  { %v3491_v36 = vpop.f32.mrf.mxu0 }
 0x25d   :  { %v336_v38 = vpop.f32.mrf.mxu0 }
 0x25e   :  { %357 = vrot.lane.b32.xlu0 %v331_v33, %s3861_s17  ;;  %350 = vrot.lane.b32.xlu1 %v336_v38, %s3860_s16 }
 0x25f   :  { %v3494_v44 = vpop.f32.mrf.mxu0 }
 0x261   :  { %v341_v46 = vpop.f32.mrf.mxu0 }
 0x262   :  { %359 = vrot.lane.b32.xlu0 %v336_v38, %s3861_s17  ;;  %368 = vrot.lane.b32.xlu1 %v336_v38, %s3859_s3 }
 0x263   :  { %v3497_v47 = vpop.f32.mrf.mxu0 }
 0x265   :  { %v605_v21 = vpop.f32.mrf.mxu0 }
 0x266   :  { %361 = vrot.lane.b32.xlu1 %v341_v46, %s3861_s17  ;;  %352 = vrot.lane.b32.xlu0 %v341_v46, %s3860_s16  ;;  %v606_v47 = vadd.f32 %v605_v21, %v529_v37  ;;  %v1032_v21 = vld [vmem:[%s4882_s7 + $0x68] sm:$0xff] }
 0x267   :  { %v3519_v23 = vpop.f32.mrf.mxu0 }
 0x269   :  { %v610_v24 = vpop.f32.mrf.mxu0 }
 0x26a   :  { %370 = vrot.lane.b32.xlu0 %v341_v46, %s3859_s3  ;;  %v611_v44 = vadd.f32 %v610_v24, %v529_v37  ;;  %v1031_v24 = vld [vmem:[%s4882_s7 + $0x60] sm:$0xff] }
 0x26b   :  { %v3522_v28 = vpop.f32.mrf.mxu0 }
 0x26c   :  { %v1030_v28 = vld [vmem:[%s4882_s7 + $0x58] sm:$0xff] }
 0x26d   :  { %v615_v29 = vpop.f32.mrf.mxu0 }
 0x26e   :  { %v616_v42 = vadd.f32 %v615_v29, %v529_v37  ;;  %v4383_v29 = vld [vmem:[%s4882_s7 + $0xd0] sm:$0xff] }
 0x26f   :  { %v3525_v31 = vpop.f32.mrf.mxu0 }
 0x270   :  { %v4390_v31 = vld [vmem:[%s4882_s7 + $0xc8] sm:$0xff] }
 0x2cc   :  { %v367_v48 = vpop.permute.xlu1 %366  ;;  %v349_v49 = vpop.permute.xlu0 %348 }
 0x2cd   :  { %v375_v50 = vsel %vm165_vm2, %v331_v33, %v349_v49 }
 0x2d0   :  { %v358_v52 = vpop.permute.xlu0 %357  ;;  %v351_v53 = vpop.permute.xlu1 %350 }
 0x2d1   :  { %v379_v55 = vsel %vm378_vm5, %v375_v50, %v358_v52  ;;  %v376_v59 = vsel %vm165_vm2, %v336_v38, %v351_v53  ;;  %v4264_v53 = vld [vmem:[%s4879_s4] sm:$0xff] }
 0x2d2   :  { %v383_v56 = vsel %vm382_vm6, %v379_v55, %v367_v48  ;;  %v4275_v55 = vld [vmem:[%s4879_s4 + $0x8] sm:$0xff] }
 0x2d3   :  { %v386_v57 = vmul.f32 %v383_v56, %v4215_v51  ;;  %v387_v58 = vmul.f32 %v383_v56, %v4220_v54  ;;  %v4284_v56 = vld [vmem:[%s4879_s4 + $0x10] sm:$0xff] }
 0x2d4   :  { %v360_v60 = vpop.permute.xlu0 %359  ;;  %v369_v63 = vpop.permute.xlu1 %368 }
 0x2d5   :  { %v380_v0 = vsel %vm378_vm5, %v376_v59, %v360_v60  ;;  %683 = vmatprep.mubr.f32.mxu1 %v387_v58 }
 0x2d6   :  { %v384_v2 = vsel %vm382_vm6, %v380_v0, %v369_v63  ;;  %684 = vmatmul.mubr.f32.vlgmr.msra.gmra.mxu1 %v386_v57 }
 0x2d7   :  { %v388_v3 = vmul.f32 %v384_v2, %v4230_v61  ;;  %v389_v4 = vmul.f32 %v384_v2, %v4235_v62 }
 0x2d8   :  { %v353_v5 = vpop.permute.xlu0 %352  ;;  %v362_v6 = vpop.permute.xlu1 %361 }
 0x2d9   :  { %v377_v7 = vsel %vm165_vm2, %v341_v46, %v353_v5  ;;  %688 = vmatprep.mubr.f32.mxu1 %v389_v4 }
 0x2da   :  { %689 = vmatmul.mubr.f32.gmra.mxu1 %v388_v3  ;;  %v381_v14 = vsel %vm378_vm5, %v377_v7, %v362_v6 }
 0x2dc   :  { %v371_v15 = vpop.permute.xlu0 %370 }
 0x2dd   :  { %v385_v17 = vsel %vm382_vm6, %v381_v14, %v371_v15  ;;  %v4305_v14 = vld [vmem:[%s4881_s6] sm:$0x7]  ;;  %s3871_s6 = smov 8  }
 0x2de   :  { %v390_v18 = vmul.f32 %v385_v17, %v4245_v9  ;;  %v391_v20 = vmul.f32 %v385_v17, %v4250_v10  ;;  %v4336_v15 = vld [vmem:[%s4882_s7 + $0xa0] sm:$0xff]  ;;  %v4345_v17 = vld [vmem:[%s4882_s7 + $0xd8] sm:$0xff] }
 0x2df   :  { %3562 = vmatpush3.msra.mxu1 %v4345_v17 }
 0x2e0   :  { %693 = vmatprep.mubr.f32.mxu1 %v391_v20  ;;  %3563 = vmatprep.subr.mxu1 %v3857_v1 }
 0x2e1   :  { %694 = vmatmul.mubr.f32.gmra.mxu1 %v390_v18  ;;  %v1033_v18 = vld [vmem:[%s4882_s7 + $0x70] sm:$0xff] }
 0x2e2   :  { %3569 = vmatprep.mubr.msk.f32.mxu1 %vm3858_vm0, %v3857_v1  ;;  %3564 = vmatpush3.msra.mxu1 %v4383_v29 }
 0x2e3   :  { %3565 = vmatprep.subr.mxu1 %v3857_v1 }
 0x2e4   :  { %3566 = vmatpush3.msra.mxu1 %v4390_v31 }
 0x2e5   :  { %3567 = vmatprep.subr.mxu1 %v3857_v1 }
 0x396   :  { %v3293_v32 = vpop.f32.mrf.mxu1 }
 0x398   :  { %v3294_v33 = vpop.f32.mrf.mxu1 }
 0x399   :  { %v3295_v48 = vadd.f32 %v3294_v33, %v3293_v32  ;;  %v4396_v32 = vld [vmem:[%s4882_s7 + $0xc0] sm:$0xff]  ;;  %v873_v33 = vsub.s32 7, %v3983_v11 }
 0x39a   :  { %v3296_v34 = vpop.f32.mrf.mxu1  ;;  %3568 = vmatpush3.msra.mxu1 %v4396_v32 }
 0x39b   :  { %v686_v52 = vadd.f32 %v3295_v48, %v606_v47  ;;  %3784 = vmatprep.subr.mxu1 %v3857_v1 }
 0x39c   :  { %v3297_v36 = vpop.f32.mrf.mxu1 }
 0x39d   :  { %v3298_v45 = vadd.f32 %v3297_v36, %v3296_v34  ;;  %v4403_v34 = vrot.slane %v3991_v13, %v873_v33  ;;  %v3171_v33 = vld [vmem:[%s4877_s2 + $0x130] sm:$0xff] }
 0x39f   :  { %v691_v50 = vadd.f32 %v3298_v45, %v611_v44  ;;  %v1036_v44 = vsub.s32 4, %v3983_v11 }
 0x3a1   :  { %v3299_v38 = vpop.f32.mrf.mxu1  ;;  %v1037_v47 = vrot.slane %v3991_v13, %v1036_v44 }
 0x3a3   :  { %v3300_v43 = vpop.f32.mrf.mxu1 }
 0x3a4   :  { %v3301_v46 = vadd.f32 %v3300_v43, %v3299_v38 }
 0x3a6   :  { %v696_v49 = vadd.f32 %v3301_v46, %v616_v42 }
 0x3a8   :  { %3527 = vmatpush3.msra.mxu0 %v696_v49 }
 0x3a9   :  { %3528 = vmatprep.subr.mxu0 %v3857_v1 }
 0x3aa   :  { %3529 = vmatpush3.msra.mxu0 %v691_v50 }
 0x3ab   :  { %3530 = vmatprep.subr.mxu0 %v3857_v1 }
 0x3ac   :  { %3531 = vmatpush3.msra.mxu0 %v686_v52 }
 0x3ad   :  { %3533 = vmatmul.mubr.msk.f32.vlgmr.msra.gmra.mxu0 %vm255_vm4, %v4264_v53  ;;  %3541 = vmatprep.subr.mxu0 %v3857_v1 }
 0x3ae   :  { %3535 = vmatprep.mubr.msk.f32.mxu0 %vm3858_vm0, %v3857_v1 }
 0x3b1   :  { %3536 = vmatmul.mubr.msk.f32.gmra.mxu0 %vm255_vm4, %v4275_v55 }
 0x3b2   :  { %3538 = vmatprep.mubr.msk.f32.mxu0 %vm3858_vm0, %v3857_v1 }
 0x3b5   :  { %3539 = vmatmul.mubr.msk.f32.gmra.mxu0 %vm255_vm4, %v4284_v56 }
 0x3b6   :  { %3547 = vmatprep.mubr.msk.f32.mxu0 %vm3858_vm0, %v3857_v1 }
 0x46d   :  { %v774_v57 = vpop.f32.mrf.mxu0 }
 0x46e   :  { %v788_v4 = vmax.f32 %v774_v57, 0.0 }
 0x46f   :  { %v3534_v58 = vpop.f32.mrf.mxu0 }
 0x470   :  { %v4299_v7 = vadd.f32 %v788_v4, %v3995_v16  ;;  %v4320_v16 = vld [vmem:[%s4882_s7 + $0xb0] sm:$0xff]  ;;  %v1285_v58 = vld [vmem:[%s4882_s7 + $0x78] sm:$0xff]  ;;  %v3190_v4 = vld [vmem:[%s4877_s2 + $0x1c8] sm:$0xff] }
 0x471   :  { %v779_v59 = vpop.f32.mrf.mxu0 }
 0x472   :  { %v789_v0 = vmax.f32 %v779_v59, 0.0  ;;  %v3193_v59 = vld [vmem:[%s4877_s2 + $0x1e0] sm:$0xff] }
 0x473   :  { %v3537_v60 = vpop.f32.mrf.mxu0 }
 0x474   :  { %v4294_v6 = vadd.f32 %v789_v0, %v4001_v19  ;;  %v4311_v19 = vld [vmem:[%s4882_s7 + $0xb8] sm:$0xff]  ;;  %v3177_v60 = vld [vmem:[%s4877_s2 + $0x160] sm:$0xff] }
 0x475   :  { %v784_v63 = vpop.f32.mrf.mxu0  ;;  %v3176_v0 = vld [vmem:[%s4877_s2 + $0x158] sm:$0xff] }
 0x476   :  { %v790_v2 = vmax.f32 %v784_v63, 0.0  ;;  %v3192_v63 = vld [vmem:[%s4877_s2 + $0x1d8] sm:$0xff] }
 0x477   :  { %v3540_v3 = vpop.f32.mrf.mxu0 }
 0x478   :  { %v4291_v5 = vadd.f32 %v790_v2, %v4007_v22  ;;  %v4329_v22 = vld [vmem:[%s4882_s7 + $0xa8] sm:$0xff]  ;;  %v3191_v2 = vld [vmem:[%s4877_s2 + $0x1d0] sm:$0xff] }
 0x479   :  { %v3175_v3 = vld [vmem:[%s4877_s2 + $0x150] sm:$0xff] }
 0x47a   :  { %3542 = vmatpush3.msra.mxu0 %v4291_v5 }
 0x47b   :  { %3543 = vmatprep.subr.mxu0 %v3857_v1 }
 0x47c   :  { %3544 = vmatpush3.msra.mxu0 %v4294_v6 }
 0x47d   :  { %3545 = vmatprep.subr.mxu0 %v3857_v1 }
 0x47e   :  { %3546 = vmatpush3.msra.mxu0 %v4299_v7 }
 0x47f   :  { %3548 = vmatmul.mubr.msk.f32.vlgmr.msra.gmra.mxu0 %vm255_vm4, %v4305_v14  ;;  %3550 = vmatprep.subr.mxu0 %v3857_v1 }
 0x480   :  { %3551 = vmatpush3.msra.mxu0 %v4311_v19  ;;  %3558 = vmatprep.mubr.msk.f32.mxu0 %vm3858_vm0, %v3857_v1 }
 0x481   :  { %3552 = vmatprep.subr.mxu0 %v3857_v1 }
 0x482   :  { %3553 = vmatpush3.msra.mxu0 %v4320_v16 }
 0x483   :  { %3554 = vmatprep.subr.mxu0 %v3857_v1 }
 0x484   :  { %3555 = vmatpush3.msra.mxu0 %v4329_v22 }
 0x485   :  { %3556 = vmatprep.subr.mxu0 %v3857_v1 }
 0x486   :  { %3557 = vmatpush3.msra.mxu0 %v4336_v15 }
 0x487   :  { %3572 = vmatprep.subr.mxu0 %v3857_v1 }
 0x53f   :  { %v863_v20 = vpop.f32.mrf.mxu0 }
 0x540   :  { %3559 = vmatmul.mubr.msk.f32.vlgmr.msra.gmra.mxu0 %vm165_vm2, %v863_v20  ;;  %v3189_v20 = vld [vmem:[%s4877_s2 + $0x1c0] sm:$0xff] }
 0x541   :  { %3573 = vmatpush3.msra.mxu0 %v1033_v18  ;;  %v3549_v23 = vpop.f32.mrf.mxu0  ;;  %3580 = vmatprep.mubr.msk.f32.mxu0 %vm3858_vm0, %v3857_v1  ;;  %v3174_v18 = vld [vmem:[%s4877_s2 + $0x148] sm:$0xff] }
 0x542   :  { %3574 = vmatprep.subr.mxu0 %v3857_v1  ;;  %v3188_v23 = vld [vmem:[%s4877_s2 + $0x1b8] sm:$0xff] }
 0x543   :  { %3575 = vmatpush3.msra.mxu0 %v1032_v21  ;;  %v3173_v21 = vld [vmem:[%s4877_s2 + $0x140] sm:$0xff] }
 0x544   :  { %3576 = vmatprep.subr.mxu0 %v3857_v1 }
 0x545   :  { %3577 = vmatpush3.msra.mxu0 %v1031_v24  ;;  %v3172_v24 = vld [vmem:[%s4877_s2 + $0x138] sm:$0xff] }
 0x546   :  { %3578 = vmatprep.subr.mxu0 %v3857_v1 }
 0x547   :  { %3579 = vmatpush3.msra.mxu0 %v1030_v28  ;;  %v3187_v28 = vld [vmem:[%s4877_s2 + $0x1b0] sm:$0xff] }
 0x548   :  { %3581 = vmatmul.mubr.msk.f32.vlgmr.msra.gmra.mxu0 %vm165_vm2, %v4299_v7  ;;  %3589 = vmatprep.subr.mxu0 %v3857_v1 }
 0x549   :  { %3583 = vmatprep.mubr.msk.f32.mxu0 %vm3858_vm0, %v3857_v1 }
 0x54c   :  { %3584 = vmatmul.mubr.msk.f32.gmra.mxu0 %vm165_vm2, %v4294_v6 }
 0x54d   :  { %3586 = vmatprep.mubr.msk.f32.mxu0 %vm3858_vm0, %v3857_v1 }
 0x550   :  { %3587 = vmatmul.mubr.msk.f32.gmra.mxu0 %vm165_vm2, %v4291_v5 }
 0x551   :  { %3595 = vmatprep.mubr.msk.f32.mxu0 %vm3858_vm0, %v3857_v1 }
 0x600   :  { %v944_v35 = vpop.f32.mrf.mxu0 }
 0x601   :  { %v945_v36 = vadd.f32 %v944_v35, %v4403_v34  ;;  %v3186_v35 = vld [vmem:[%s4877_s2 + $0x1a8] sm:$0xff] }
 0x602   :  { %v3560_v37 = vpop.f32.mrf.mxu0 }
 0x603   :  { %v948_v38 = vmax.f32 %v945_v36, 0.0  ;;  %v3170_v36 = vld [vmem:[%s4877_s2 + $0x128] sm:$0xff]  ;;  %v3185_v37 = vld [vmem:[%s4877_s2 + $0x1a0] sm:$0xff] }
 0x605   :  { %3570 = vmatmul.mubr.msk.f32.vlgmr.msra.gmra.mxu1 %vm165_vm2, %v948_v38  ;;  %v3169_v38 = vld [vmem:[%s4877_s2 + $0x120] sm:$0xff] }
 0x606   :  { %3598 = vmatprep.mubr.msk.f32.mxu1 %vm3858_vm0, %v3857_v1 }
 0x608   :  { %v1113_v42 = vpop.f32.mrf.mxu0 }
 0x609   :  { %v1114_v57 = vadd.f32 %v1113_v42, %v1037_v47 }
 0x60a   :  { %v3582_v43 = vpop.f32.mrf.mxu0 }
 0x60c   :  { %v1118_v45 = vpop.f32.mrf.mxu0 }
 0x60d   :  { %v1119_v52 = vadd.f32 %v1118_v45, %v1037_v47  ;;  %v3184_v45 = vld [vmem:[%s4877_s2 + $0x198] sm:$0xff] }
 0x60e   :  { %v3585_v46 = vpop.f32.mrf.mxu0 }
 0x60f   :  { %v3168_v46 = vld [vmem:[%s4877_s2 + $0x118] sm:$0xff] }
 0x610   :  { %v1123_v48 = vpop.f32.mrf.mxu0 }
 0x611   :  { %v1124_v49 = vadd.f32 %v1123_v48, %v1037_v47  ;;  %v3183_v47 = vld [vmem:[%s4877_s2 + $0x190] sm:$0xff]  ;;  %v1376_v48 = vld [vmem:[%s4882_s7 + $0x98] sm:$0xff] }
 0x612   :  { %v3588_v50 = vpop.f32.mrf.mxu0 }
 0x613   :  { %3590 = vmatpush3.msra.mxu0 %v1124_v49  ;;  %3787 = vmatpush3.msra.mxu1 %v1124_v49  ;;  %v3167_v49 = vld [vmem:[%s4877_s2 + $0x110] sm:$0xff]  ;;  %v3182_v50 = vld [vmem:[%s4877_s2 + $0x188] sm:$0xff] }
 0x614   :  { %3591 = vmatprep.subr.mxu0 %v3857_v1  ;;  %3785 = vmatprep.subr.mxu1 %v3857_v1 }
 0x615   :  { %3592 = vmatpush3.msra.mxu0 %v1119_v52  ;;  %3788 = vmatpush3.msra.mxu1 %v1119_v52  ;;  %v1375_v52 = vld [vmem:[%s4882_s7 + $0x90] sm:$0xff] }
 0x616   :  { %3593 = vmatprep.subr.mxu0 %v3857_v1  ;;  %3786 = vmatprep.subr.mxu1 %v3857_v1 }
 0x617   :  { %3594 = vmatpush3.msra.mxu0 %v1114_v57  ;;  %3789 = vmatpush3.msra.mxu1 %v1114_v57  ;;  %v3166_v57 = vld [vmem:[%s4877_s2 + $0x108] sm:$0xff] }
 0x618   :  { %3596 = vmatmul.mubr.msk.f32.vlgmr.msra.gmra.mxu0 %vm255_vm4, %v4050_v39  ;;  %3599 = vmatmul.mubr.msk.f32.vlgmr.msra.gmra.mxu1 %vm255_vm4, %v4061_v40  ;;  %v3196_v39 = vld [vmem:[%s4877_s2 + $0x1f8] sm:$0xff]  ;;  %v3195_v40 = vld [vmem:[%s4877_s2 + $0x1f0] sm:$0xff] }
 0x619   :  { %3601 = vmatprep.mubr.msk.f32.mxu1 %vm3858_vm0, %v3857_v1  ;;  %3604 = vmatprep.subr.mxu0 %v3857_v1 }
 0x61a   :  { %3605 = vmatpush3.msra.mxu0 %v1285_v58  ;;  %3606 = vmatprep.mubr.msk.f32.mxu0 %vm3858_vm0, %v3857_v1  ;;  %v3181_v58 = vld [vmem:[%s4877_s2 + $0x180] sm:$0xff] }
 0x61b   :  { %3615 = vmatprep.subr.mxu1 %v3857_v1  ;;  %3346 = vmatprep.subr.mxu0 %v3196_v39  ;;  %v1374_v39 = vld [vmem:[%s4882_s7 + $0x88] sm:$0xff] }
 0x61c   :  { %3602 = vmatmul.mubr.msk.f32.gmra.mxu1 %vm255_vm4, %v4070_v41  ;;  %3607 = vmatmul.mubr.msk.f32.vlgmr.msra.gmra.mxu0 %vm429_vm3, %v4019_v25  ;;  %v3180_v25 = vld [vmem:[%s4877_s2 + $0x178] sm:$0xff]  ;;  %v3178_v41 = vld [vmem:[%s4877_s2 + $0x168] sm:$0xff] }
 0x61d   :  { %3609 = vmatprep.mubr.msk.f32.mxu0 %vm3858_vm0, %v3857_v1  ;;  %3623 = vmatprep.mubr.msk.f32.mxu1 %vm3858_vm0, %v3857_v1 }
 0x61e   :  { %3347 = vmatpush3.msra.mxu0 %v3180_v25  ;;  %3616 = vmatpush3.msra.mxu1 %v1376_v48  ;;  %v3165_v25 = vld [vmem:[%s4877_s2 + $0x100] sm:$0xff] }
 0x61f   :  { %3348 = vmatprep.subr.mxu0 %v3195_v40  ;;  %3617 = vmatprep.subr.mxu1 %v3857_v1  ;;  %v1373_v40 = vld [vmem:[%s4882_s7 + $0x80] sm:$0xff] }
 0x620   :  { %3610 = vmatmul.mubr.msk.f32.gmra.mxu0 %vm429_vm3, %v4028_v26  ;;  %v3179_v26 = vld [vmem:[%s4877_s2 + $0x170] sm:$0xff]  ;;  %3618 = vmatpush3.msra.mxu1 %v1375_v52 }
 0x621   :  { %3612 = vmatprep.mubr.msk.f32.mxu0 %vm3858_vm0, %v3857_v1  ;;  %3349 = vmatpush3.msra.mxu0 %v3179_v26  ;;  %v1288_v26 = vsub.s32 5, %v3983_v11 }
 0x622   :  { %3619 = vmatprep.subr.mxu1 %v3857_v1 }
 0x623   :  { %3620 = vmatpush3.msra.mxu1 %v1374_v39 }
 0x624   :  { %3613 = vmatmul.mubr.msk.f32.gmra.mxu0 %vm429_vm3, %v4037_v27  ;;  %v3194_v27 = vld [vmem:[%s4877_s2 + $0x1e8] sm:$0xff]  ;;  %3621 = vmatprep.subr.mxu1 %v3857_v1 }
 0x625   :  { %3350 = vmatprep.subr.mxu0 %v3194_v27  ;;  %3622 = vmatpush3.msra.mxu1 %v1373_v40 }
 0x626   :  { %3351 = vmatpush3.msra.mxu0 %v3178_v41  ;;  %3632 = vmatprep.subr.mxu1 %v3857_v1 }
 0x627   :  { %3352 = vmatprep.subr.mxu0 %v3193_v59  ;;  %v1289_v59 = vrot.slane %v3991_v13, %v1288_v26 }
 0x628   :  { %3353 = vmatpush3.msra.mxu0 %v3177_v60 }
 0x629   :  { %3354 = vmatprep.subr.mxu0 %v3192_v63 }
 0x62a   :  { %3355 = vmatpush3.msra.mxu0 %v3176_v0 }
 0x62b   :  { %3356 = vmatprep.subr.mxu0 %v3191_v2 }
 0x62c   :  { %3357 = vmatpush3.msra.mxu0 %v3175_v3 }
 0x62d   :  { %3358 = vmatprep.subr.mxu0 %v3190_v4 }
 0x62e   :  { %3359 = vmatpush3.msra.mxu0 %v3174_v18 }
 0x62f   :  { %3360 = vmatprep.subr.mxu0 %v3189_v20 }
 0x630   :  { %3361 = vmatpush3.msra.mxu0 %v3173_v21 }
 0x631   :  { %3362 = vmatprep.subr.mxu0 %v3188_v23 }
 0x632   :  { %3363 = vmatpush3.msra.mxu0 %v3172_v24 }
 0x633   :  { %3364 = vmatprep.subr.mxu0 %v3187_v28 }
 0x634   :  { %3365 = vmatpush3.msra.mxu0 %v3171_v33 }
 0x635   :  { %3366 = vmatprep.subr.mxu0 %v3186_v35 }
 0x636   :  { %3367 = vmatpush3.msra.mxu0 %v3170_v36 }
 0x637   :  { %3368 = vmatprep.subr.mxu0 %v3185_v37 }
 0x638   :  { %3369 = vmatpush3.msra.mxu0 %v3169_v38 }
 0x639   :  { %3370 = vmatprep.subr.mxu0 %v3184_v45 }
 0x63a   :  { %3371 = vmatpush3.msra.mxu0 %v3168_v46 }
 0x63b   :  { %3372 = vmatprep.subr.mxu0 %v3183_v47 }
 0x63c   :  { %3373 = vmatpush3.msra.mxu0 %v3167_v49 }
 0x63d   :  { %3374 = vmatprep.subr.mxu0 %v3182_v50 }
 0x63e   :  { %3375 = vmatpush3.msra.mxu0 %v3166_v57 }
 0x63f   :  { %3376 = vmatprep.subr.mxu0 %v3181_v58 }
 0x640   :  { %3377 = vmatpush3.msra.mxu0 %v3165_v25 }
 0x641   :  { %3678 = vmatprep.subr.mxu0 %v3857_v1 }
 0x6c5   :  { %v4516_v42 = vpop.f32.mrf.mxu1 }
 0x6c7   :  { %v3571_v43 = vpop.f32.mrf.mxu1 }
 0x6d8   :  { %v1193_v27 = vpop.f32.mrf.mxu0  ;;  %v1198_v41 = vpop.f32.mrf.mxu1 }
 0x6d9   :  { %1219 = vrot.lane.b32.xlu0 %v1193_v27, %s3861_s17  ;;  %1210 = vrot.lane.b32.xlu1 %v1193_v27, %s3860_s16 }
 0x6da   :  { %v3597_v60 = vpop.f32.mrf.mxu0  ;;  %v3600_v63 = vpop.f32.mrf.mxu1 }
 0x6dc   :  { %v1203_v0 = vpop.f32.mrf.mxu1  ;;  %v1356_v2 = vpop.f32.mrf.mxu0 }
 0x6dd   :  { %1212 = vrot.lane.b32.xlu0 %v1198_v41, %s3860_s16  ;;  %1228 = vrot.lane.b32.xlu1 %v1193_v27, %s3859_s3  ;;  %v1357_v3 = vadd.f32 %v1356_v2, %v1289_v59 }
 0x6de   :  { %v3603_v4 = vpop.f32.mrf.mxu1  ;;  %v3608_v18 = vpop.f32.mrf.mxu0 }
 0x6df   :  { %v1370_v20 = vmax.f32 %v1357_v3, 0.0 }
 0x6e0   :  { %v1361_v21 = vpop.f32.mrf.mxu0 }
 0x6e1   :  { %1230 = vrot.lane.b32.xlu0 %v1198_v41, %s3859_s3  ;;  %1221 = vrot.lane.b32.xlu1 %v1198_v41, %s3861_s17  ;;  %v1362_v23 = vadd.f32 %v1361_v21, %v1289_v59 }
 0x6e2   :  { %3624 = vmatmul.mubr.msk.f32.vlgmr.msra.gmra.mxu1 %vm165_vm2, %v1370_v20  ;;  %v3611_v13 = vpop.f32.mrf.mxu0 }
 0x6e3   :  { %v1371_v24 = vmax.f32 %v1362_v23, 0.0  ;;  %3626 = vmatprep.mubr.msk.f32.mxu1 %vm3858_vm0, %v3857_v1 }
 0x6e4   :  { %v1366_v28 = vpop.f32.mrf.mxu0 }
 0x6e5   :  { %1223 = vrot.lane.b32.xlu0 %v1203_v0, %s3861_s17  ;;  %1214 = vrot.lane.b32.xlu1 %v1203_v0, %s3860_s16  ;;  %v1367_v33 = vadd.f32 %v1366_v28, %v1289_v59 }
 0x6e6   :  { %3627 = vmatmul.mubr.msk.f32.gmra.mxu1 %vm165_vm2, %v1371_v24  ;;  %v3614_v35 = vpop.f32.mrf.mxu0  ;;  %v1379_v24 = vsub.s32 6, %v3983_v11 }
 0x6e7   :  { %v1372_v36 = vmax.f32 %v1367_v33, 0.0  ;;  %3629 = vmatprep.mubr.msk.f32.mxu1 %vm3858_vm0, %v3857_v1 }
 0x6e9   :  { %1232 = vrot.lane.b32.xlu1 %v1203_v0, %s3859_s3 }
 0x6ea   :  { %3630 = vmatmul.mubr.msk.f32.gmra.mxu1 %vm165_vm2, %v1372_v36 }
 0x6eb   :  { %3638 = vmatprep.mubr.msk.f32.mxu1 %vm3858_vm0, %v3857_v1 }
 0x74b   :  { %v1220_v37 = vpop.permute.xlu0 %1219  ;;  %v1211_v38 = vpop.permute.xlu1 %1210 }
 0x74c   :  { %v1237_v43 = vsel %vm165_vm2, %v1193_v27, %v1211_v38 }
 0x74d   :  { %v1240_v46 = vsel %vm378_vm5, %v1237_v43, %v1220_v37 }
 0x74f   :  { %v1213_v45 = vpop.permute.xlu0 %1212  ;;  %v1229_v47 = vpop.permute.xlu1 %1228 }
 0x750   :  { %v1243_v48 = vsel %vm382_vm6, %v1240_v46, %v1229_v47  ;;  %v1238_v52 = vsel %vm165_vm2, %v1198_v41, %v1213_v45 }
 0x751   :  { %v1246_v49 = vmul.f32 %v1243_v48, %v4215_v51  ;;  %v1247_v50 = vmul.f32 %v1243_v48, %v4220_v54 }
 0x753   :  { %v1231_v57 = vpop.permute.xlu0 %1230  ;;  %1534 = vmatprep.mubr.f32.mxu0 %v1247_v50  ;;  %v1222_v58 = vpop.permute.xlu1 %1221 }
 0x754   :  { %v1241_v39 = vsel %vm378_vm5, %v1238_v52, %v1222_v58  ;;  %1535 = vmatmul.mubr.f32.vlgmr.msra.gmra.mxu0 %v1246_v49 }
 0x755   :  { %v1244_v25 = vsel %vm382_vm6, %v1241_v39, %v1231_v57 }
 0x756   :  { %v1249_v40 = vmul.f32 %v1244_v25, %v4235_v62  ;;  %v1248_v27 = vmul.f32 %v1244_v25, %v4230_v61 }
 0x757   :  { %v1215_v59 = vpop.permute.xlu1 %1214  ;;  %v1224_v60 = vpop.permute.xlu0 %1223 }
 0x758   :  { %v1239_v51 = vsel %vm165_vm2, %v1203_v0, %v1215_v59  ;;  %1539 = vmatprep.mubr.f32.mxu0 %v1249_v40 }
 0x759   :  { %1540 = vmatmul.mubr.f32.gmra.mxu0 %v1248_v27  ;;  %v1242_v54 = vsel %vm378_vm5, %v1239_v51, %v1224_v60  ;;  %v1934_v60 = vld [vmem:[%s4883_s8 + $0x20] sm:$0xff] }
 0x75b   :  { %v1233_v41 = vpop.permute.xlu1 %1232 }
 0x75c   :  { %v1245_v63 = vsel %vm382_vm6, %v1242_v54, %v1233_v41  ;;  %v1854_v54 = vld [vmem:[%s4883_s8 + $0x8] sm:$0xff]  ;;  %v1853_v41 = vld [vmem:[%s4883_s8] sm:$0xff] }
 0x75d   :  { %v1250_v2 = vmul.f32 %v1245_v63, %v4245_v9  ;;  %v1251_v3 = vmul.f32 %v1245_v63, %v4250_v10  ;;  %v3834_v9 = vld [vmem:[%s4884_s9] sm:$0xff] }
 0x75e   :  { %v1380_v10 = vrot.slane %v3834_v9, %v1379_v24 }
 0x75f   :  { %1544 = vmatprep.mubr.f32.mxu0 %v1251_v3  ;;  %v4696_v3 = vld [vmem:[%s4885_s10] sm:$0x7] }
 0x760   :  { %1545 = vmatmul.mubr.f32.gmra.mxu0 %v1250_v2 }
 0x761   :  { %3686 = vmatprep.mubr.msk.f32.mxu0 %vm3858_vm0, %v3857_v1 }
 0x7a2   :  { %v1456_v61 = vpop.f32.mrf.mxu1 }
 0x7a3   :  { %v1457_v45 = vadd.f32 %v1456_v61, %v1380_v10  ;;  %v1941_v61 = vrot.slane %v4696_v3, %v4042_v30 }
 0x7a4   :  { %v3625_v62 = vpop.f32.mrf.mxu1 }
 0x7a6   :  { %v1461_v4 = vpop.f32.mrf.mxu1 }
 0x7a7   :  { %v1462_v37 = vadd.f32 %v1461_v4, %v1380_v10 }
 0x7a8   :  { %v3628_v0 = vpop.f32.mrf.mxu1 }
 0x7aa   :  { %v1466_v18 = vpop.f32.mrf.mxu1 }
 0x7ab   :  { %v1467_v35 = vadd.f32 %v1466_v18, %v1380_v10  ;;  %v1860_v18 = vrot.slane %v4696_v3, %v3986_v12 }
 0x7ac   :  { %v3631_v20 = vpop.f32.mrf.mxu1 }
 0x814   :  { %v3378_v21 = vpop.f32.mrf.mxu0 }
 0x816   :  { %v3379_v23 = vpop.f32.mrf.mxu0 }
 0x817   :  { %v3380_v46 = vadd.f32 %v3379_v23, %v3378_v21 }
 0x819   :  { %v3381_v13 = vpop.f32.mrf.mxu0  ;;  %v1537_v49 = vadd.f32 %v3380_v46, %v1457_v45 }
 0x81b   :  { %v3382_v28 = vpop.f32.mrf.mxu0 }
 0x81c   :  { %v3383_v38 = vadd.f32 %v3382_v28, %v3381_v13 }
 0x81e   :  { %v1542_v48 = vadd.f32 %v3383_v38, %v1462_v37 }
 0x820   :  { %v3384_v33 = vpop.f32.mrf.mxu0 }
 0x822   :  { %v3385_v36 = vpop.f32.mrf.mxu0 }
 0x823   :  { %v3386_v43 = vadd.f32 %v3385_v36, %v3384_v33 }
 0x825   :  { %v1547_v47 = vadd.f32 %v3386_v43, %v1467_v35 }
 0x827   :  { %3633 = vmatpush3.msra.mxu1 %v1547_v47 }
 0x828   :  { %3634 = vmatprep.subr.mxu1 %v3857_v1 }
 0x829   :  { %3635 = vmatpush3.msra.mxu1 %v1542_v48 }
 0x82a   :  { %3636 = vmatprep.subr.mxu1 %v3857_v1 }
 0x82b   :  { %3637 = vmatpush3.msra.mxu1 %v1537_v49 }
 0x82c   :  { %3639 = vmatmul.mubr.msk.f32.vlgmr.msra.gmra.mxu1 %vm255_vm4, %v4264_v53  ;;  %3647 = vmatprep.subr.mxu1 %v3857_v1 }
 0x82d   :  { %3641 = vmatprep.mubr.msk.f32.mxu1 %vm3858_vm0, %v3857_v1 }
 0x830   :  { %3642 = vmatmul.mubr.msk.f32.gmra.mxu1 %vm255_vm4, %v4275_v55 }
 0x831   :  { %3644 = vmatprep.mubr.msk.f32.mxu1 %vm3858_vm0, %v3857_v1 }
 0x834   :  { %3645 = vmatmul.mubr.msk.f32.gmra.mxu1 %vm255_vm4, %v4284_v56 }
 0x835   :  { %3653 = vmatprep.mubr.msk.f32.mxu1 %vm3858_vm0, %v3857_v1 }
 0x8ec   :  { %v1616_v50 = vpop.f32.mrf.mxu1 }
 0x8ed   :  { %v1630_v27 = vmax.f32 %v1616_v50, 0.0 }
 0x8ee   :  { %v3640_v52 = vpop.f32.mrf.mxu1 }
 0x8ef   :  { %v1633_v56 = vadd.f32 %v1630_v27, %v4299_v7  ;;  %v1856_v7 = vld [vmem:[%s4883_s8 + $0x18] sm:$0xff] }
 0x8f0   :  { %v1621_v53 = vpop.f32.mrf.mxu1  ;;  %3679 = vmatpush3.msra.mxu0 %v1856_v7 }
 0x8f1   :  { %v1631_v39 = vmax.f32 %v1621_v53, 0.0  ;;  %3680 = vmatprep.subr.mxu0 %v3857_v1 }
 0x8f2   :  { %v3643_v57 = vpop.f32.mrf.mxu1 }
 0x8f3   :  { %v1634_v59 = vadd.f32 %v1631_v39, %v4294_v6 }
 0x8f4   :  { %v1626_v58 = vpop.f32.mrf.mxu1 }
 0x8f5   :  { %v1632_v25 = vmax.f32 %v1626_v58, 0.0 }
 0x8f6   :  { %v3646_v40 = vpop.f32.mrf.mxu1 }
 0x8f7   :  { %v1635_v55 = vadd.f32 %v1632_v25, %v4291_v5 }
 0x8f9   :  { %3648 = vmatpush3.msra.mxu1 %v1635_v55  ;;  %v2087_v55 = vld [vmem:[%s4883_s8 + $0x50] sm:$0xff] }
 0x8fa   :  { %3649 = vmatprep.subr.mxu1 %v3857_v1 }
 0x8fb   :  { %3650 = vmatpush3.msra.mxu1 %v1634_v59  ;;  %v2086_v59 = vld [vmem:[%s4883_s8 + $0x48] sm:$0xff] }
 0x8fc   :  { %3651 = vmatprep.subr.mxu1 %v3857_v1 }
 0x8fd   :  { %3652 = vmatpush3.msra.mxu1 %v1633_v56 }
 0x8fe   :  { %3654 = vmatmul.mubr.msk.f32.vlgmr.msra.gmra.mxu1 %vm255_vm4, %v4305_v14  ;;  %3656 = vmatprep.subr.mxu1 %v3857_v1  ;;  %v1855_v14 = vld [vmem:[%s4883_s8 + $0x10] sm:$0xff] }
 0x8ff   :  { %3657 = vmatpush3.msra.mxu1 %v4311_v19  ;;  %3664 = vmatprep.mubr.msk.f32.mxu1 %vm3858_vm0, %v3857_v1 }
 0x900   :  { %3658 = vmatprep.subr.mxu1 %v3857_v1  ;;  %3681 = vmatpush3.msra.mxu0 %v1855_v14 }
 0x901   :  { %3659 = vmatpush3.msra.mxu1 %v4320_v16  ;;  %3682 = vmatprep.subr.mxu0 %v3857_v1 }
 0x902   :  { %3660 = vmatprep.subr.mxu1 %v3857_v1  ;;  %3683 = vmatpush3.msra.mxu0 %v1854_v54 }
 0x903   :  { %3661 = vmatpush3.msra.mxu1 %v4329_v22  ;;  %3684 = vmatprep.subr.mxu0 %v3857_v1 }
 0x904   :  { %3662 = vmatprep.subr.mxu1 %v3857_v1  ;;  %3685 = vmatpush3.msra.mxu0 %v1853_v41 }
 0x905   :  { %3663 = vmatpush3.msra.mxu1 %v4336_v15  ;;  %3700 = vmatprep.subr.mxu0 %v3857_v1 }
 0x906   :  { %3667 = vmatprep.subr.mxu1 %v3857_v1 }
 0x9be   :  { %v1702_v5 = vpop.f32.mrf.mxu1 }
 0x9bf   :  { %3665 = vmatmul.mubr.msk.f32.vlgmr.msra.gmra.mxu1 %vm165_vm2, %v1702_v5 }
 0x9c0   :  { %v3655_v6 = vpop.f32.mrf.mxu1  ;;  %3668 = vmatpush3.msra.mxu1 %v4345_v17  ;;  %3675 = vmatprep.mubr.msk.f32.mxu1 %vm3858_vm0, %v3857_v1  ;;  %v1937_v17 = vld [vmem:[%s4883_s8 + $0x38] sm:$0xff] }
 0x9c1   :  { %3669 = vmatprep.subr.mxu1 %v3857_v1 }
 0x9c2   :  { %3670 = vmatpush3.msra.mxu1 %v4383_v29  ;;  %v4661_v29 = vld [vmem:[%s4884_s9 + $0x8] sm:$0xff] }
 0x9c3   :  { %3671 = vmatprep.subr.mxu1 %v3857_v1  ;;  %v2070_v52 = vrot.slane %v4661_v29, %v1036_v44  ;;  %v2079_v27 = vrot.slane %v4661_v29, %v1288_v26  ;;  %v2088_v44 = vld [vmem:[%s4883_s8 + $0x58] sm:$0xff]  ;;  %v2085_v26 = vld [vmem:[%s4883_s8 + $0x40] sm:$0xff] }
 0x9c4   :  { %3672 = vmatpush3.msra.mxu1 %v4390_v31  ;;  %v1936_v31 = vld [vmem:[%s4883_s8 + $0x30] sm:$0xff] }
 0x9c5   :  { %3673 = vmatprep.subr.mxu1 %v3857_v1 }
 0x9c6   :  { %3674 = vmatpush3.msra.mxu1 %v4396_v32  ;;  %v956_v32 = vrot.slane %v4661_v29, %v3986_v12 }
 0x9c7   :  { %3689 = vmatprep.subr.mxu1 %v3857_v1 }
 0x9c8   :  { %v1027_v51 = vadd.f32 %v4516_v42, %v956_v32 }
 0xa7f   :  { %v1775_v19 = vpop.f32.mrf.mxu1 }
 0xa80   :  { %v1776_v16 = vadd.f32 %v1775_v19, %v4403_v34  ;;  %v1935_v34 = vld [vmem:[%s4883_s8 + $0x28] sm:$0xff]  ;;  %s3862_s8 = smov 88  }
 0xa81   :  { %v3666_v22 = vpop.f32.mrf.mxu1 }
 0xa82   :  { %v1779_v15 = vmax.f32 %v1776_v16, 0.0 }
 0xa84   :  { %3676 = vmatmul.mubr.msk.f32.vlgmr.msra.gmra.mxu1 %vm165_vm2, %v1779_v15 }
 0xa85   :  { %3690 = vmatpush3.msra.mxu1 %v1937_v17  ;;  %3697 = vmatprep.mubr.msk.f32.mxu1 %vm3858_vm0, %v3857_v1 }
 0xa86   :  { %3691 = vmatprep.subr.mxu1 %v3857_v1 }
 0xa87   :  { %3692 = vmatpush3.msra.mxu1 %v1936_v31  ;;  %v2092_v31 = vrot.slane %v4696_v3, %v427_v8 }
 0xa88   :  { %3693 = vmatprep.subr.mxu1 %v3857_v1 }
 0xa89   :  { %3694 = vmatpush3.msra.mxu1 %v1935_v34 }
 0xa8a   :  { %3695 = vmatprep.subr.mxu1 %v3857_v1 }
 0xa8b   :  { %3696 = vmatpush3.msra.mxu1 %v1934_v60 }
 0xa8c   :  { %3698 = vmatmul.mubr.msk.f32.vlgmr.msra.gmra.mxu1 %vm165_vm2, %v1027_v51  ;;  %3711 = vmatprep.subr.mxu1 %v3857_v1 }
 0xa8d   :  { %3713 = vmatprep.mubr.msk.f32.mxu1 %vm3858_vm0, %v3857_v1 }
 0xb44   :  { %v1849_v42 = vpop.f32.mrf.mxu1 }
 0xb45   :  { %v1850_v63 = vadd.f32 %v1849_v42, %v956_v32 }
 0xb46   :  { %v3677_v2 = vpop.f32.mrf.mxu1 }
 0xb47   :  { %3687 = vmatmul.mubr.msk.f32.vlgmr.msra.gmra.mxu0 %vm165_vm2, %v1850_v63 }
 0xb48   :  { %3708 = vmatprep.mubr.msk.f32.mxu0 %vm3858_vm0, %v3857_v1  ;;  %3701 = vmatpush3.msra.mxu0 %v2088_v44 }
 0xb49   :  { %3702 = vmatprep.subr.mxu0 %v3857_v1 }
 0xb4a   :  { %3703 = vmatpush3.msra.mxu0 %v2087_v55 }
 0xb4b   :  { %3704 = vmatprep.subr.mxu0 %v3857_v1 }
 0xb4c   :  { %v2011_v62 = vpop.f32.mrf.mxu1  ;;  %3705 = vmatpush3.msra.mxu0 %v2086_v59 }
 0xb4d   :  { %v2012_v4 = vadd.f32 %v2011_v62, %v1941_v61  ;;  %3706 = vmatprep.subr.mxu0 %v3857_v1 }
 0xb4e   :  { %v3699_v0 = vpop.f32.mrf.mxu1  ;;  %3707 = vmatpush3.msra.mxu0 %v2085_v26 }
 0xb4f   :  { %2023 = vrot.lane.b32.xlu0 %v2012_v4, %s3861_s17  ;;  %3716 = vmatprep.subr.mxu0 %v3857_v1 }
 0xbc1   :  { %v2024_v33 = vpop.permute.xlu0 %2023 }
 0xc07   :  { %v1930_v20 = vpop.f32.mrf.mxu0 }
 0xc08   :  { %v1931_v21 = vadd.f32 %v1930_v20, %v1860_v18 }
 0xc09   :  { %v3688_v23 = vpop.f32.mrf.mxu0 }
 0xc0a   :  { %v2015_v13 = vadd.f32 %v2012_v4, %v1931_v21 }
 0xc0c   :  { %v3211_v24 = vmul.f32 -1.442695, %v2015_v13 }
 0xc0e   :  { %3808 = vpow2.f32 %v3211_v24 }
 0xc1b   :  { %v3809_v28 = vpop.eup %3808 }
 0xc1c   :  { %v2019_v9 = vadd.f32 1.0, %v3809_v28 }
 0xc1e   :  { %3810 = vrcp.f32 %v2019_v9 }
 0xc2b   :  { %v3811_v10 = vpop.eup %3810 }
 0xc2c   :  { %v2026_v35 = vmul.f32 %v3811_v10, %v2024_v33  ;;  %v2033_v43 = vsub.f32 1.0, %v3811_v10 }
 0xc2e   :  { %2028 = vrot.lane.b32.xlu1 %v2026_v35, %s3861_s17 }
 0xc32   :  { %2039 = vrot.lane.b32.xlu1 %v1027_v51, %s3860_s16 }
 0xca0   :  { %v2029_v36 = vpop.permute.xlu1 %2028 }
 0xca1   :  { %v2031_v37 = vadd.f32 %v2029_v36, %v1931_v21 }
 0xca3   :  { %3812 = vtanh.f32 %v2031_v37 }
 0xca4   :  { %v2040_v38 = vpop.permute.xlu1 %2039 }
 0xca5   :  { %v2042_v46 = vmul.f32 %v3811_v10, %v2040_v38 }
 0xcb0   :  { %v3813_v12 = vpop.eup %3812 }
 0xcb1   :  { %2035 = vrot.lane.b32.xlu0 %v3813_v12, %s3859_s3 }
 0xd23   :  { %v2036_v45 = vpop.permute.xlu0 %2035 }
 0xd24   :  { %v2038_v47 = vmul.f32 %v2036_v45, %v2033_v43 }
 0xd26   :  { %v2043_v48 = vadd.f32 %v2042_v46, %v2038_v47 }
 0xd28   :  { %2045 = vrot.lane.b32.xlu0 %v2043_v48, %s3859_s3 }
 0xd9a   :  { %v2046_v49 = vpop.permute.xlu0 %2045 }
 0xd9b   :  { %v2049_v50 = vsel %vm2048_vm7, %v2046_v49, 0.0 }
 0xd9c   :  { %2050 = vadd.xlane.f32.xlu1 %v2049_v50 }
 0xdad   :  { %2072 = vrot.lane.b32.xlu1 %v2070_v52, %s3860_s16 }
 0xe25   :  { %v2051_v53 = vpop.xlane.xlu1 %2050 }
 0xe26   :  { %v2053_v57 = vmul.f32 0.03125, %v2051_v53 }
 0xe28   :  { %v2054_v58 = vsub.f32 %v2043_v48, %v2053_v57 }
 0xe29   :  { %v2073_v14 = vpop.permute.xlu1 %2072 }
 0xe2a   :  { %v2055_v39 = vmul.f32 %v2054_v58, %v2054_v58 }
 0xe2c   :  { %2057 = vrot.lane.b32.xlu0 %v2055_v39, %s3859_s3 }
 0xe9e   :  { %v2058_v25 = vpop.permute.xlu0 %2057 }
 0xe9f   :  { %v2060_v40 = vsel %vm2048_vm7, %v2058_v25, 0.0 }
 0xea0   :  { %2061 = vadd.xlane.f32.xlu0 %v2060_v40 }
 0xeb6   :  { %2081 = vrot.lane.b32.xlu0 %v2079_v27, %s3860_s16 }
 0xf29   :  { %v2062_v56 = vpop.xlane.xlu0 %2061 }
 0xf2a   :  { %v2063_v5 = vmul.f32 0.03125, %v2062_v56 }
 0xf2c   :  { %v2064_v6 = vadd.f32 1e-05, %v2063_v5 }
 0xf2d   :  { %v2082_v16 = vpop.permute.xlu0 %2081 }
 0xf2e   :  { %3814 = vrsqrt.f32 %v2064_v6 }
 0xf3b   :  { %v3815_v7 = vpop.eup %3814 }
 0xf3c   :  { %v2066_v19 = vmul.f32 %v3815_v7, %v2054_v58 }
 0xf3e   :  { %v2075_v22 = vmul.f32 %v2073_v14, %v2066_v19 }
 0xf40   :  { %v2084_v15 = vadd.f32 %v2082_v16, %v2075_v22 }
 0xf42   :  { %2094 = vrot.lane.b32.xlu1 %v2084_v15, %s3859_s3 }
 0xfb4   :  { %v2095_v17 = vpop.permute.xlu1 %2094 }
 0xfb5   :  { %3709 = vmatmul.mubr.msk.f32.vlgmr.msra.gmra.mxu0 %vm165_vm2, %v2095_v17 }
 0xfb6   :  { %3718 = vmatprep.mubr.msk.f32.mxu0 %vm3858_vm0, %v3857_v1 }
0x1075   :  { %v2164_v32 = vpop.f32.mrf.mxu0 }
0x1076   :  { %v4744_v34 = vadd.f32 %v2164_v32, %v2092_v31 }
0x1077   :  { %v3710_v60 = vpop.f32.mrf.mxu0 }
0x1078   :  { %2339 = vrot.lane.b32.xlu0 %v4744_v34, %s3862_s8  ;;  %2169 = vrot.lane.b32.xlu1 %v4744_v34, %s3859_s3  ;;  %s3868_s3 = smov 48   ;;  %v2855_v60 = vld [vmem:[%s4882_s7 + $0xf0] sm:$0xff] }
0x107c   :  { %2506 = vrot.lane.b32.xlu0 %v4744_v34, %s3863_s28  ;;  %2337 = vrot.lane.b32.xlu1 %v4744_v34, %s3864_s5 }
0x1080   :  { %2673 = vrot.lane.b32.xlu0 %v4744_v34, %s3865_s29  ;;  %2504 = vrot.lane.b32.xlu1 %v4744_v34, %s3866_s30 }
0x1084   :  { %2671 = vrot.lane.b32.xlu1 %v4744_v34, %s3867_s12 }
0x10ea   :  { %v2340_v11 = vpop.permute.xlu0 %2339  ;;  %v2170_v8 = vpop.permute.xlu1 %2169 }
0x10eb   :  { %3712 = vmatpush3.xpose.msk.msra.mxu1 %vm429_vm3, %v2170_v8 }
0x10ec   :  { %3721 = vmatprep.subr.mxu1 %v3857_v1 }
0x10ee   :  { %3714 = vmatmul.mubr.msk.f32.vlgmr.msra.gmra.mxu1 %vm429_vm3, %v4744_v34  ;;  %v2338_v51 = vpop.permute.xlu1 %2337  ;;  %v2507_v54 = vpop.permute.xlu0 %2506 }
0x10ef   :  { %3722 = vmatpush3.xpose.msk.msra.mxu1 %vm429_vm3, %v2340_v11  ;;  %3723 = vmatprep.mubr.msk.f32.mxu1 %vm3858_vm0, %v3857_v1  ;;  %v2854_v11 = vld [vmem:[%s4882_s7 + $0xe8] sm:$0xff] }
0x10f0   :  { %3731 = vmatprep.subr.mxu1 %v3857_v1 }
0x10f2   :  { %3724 = vmatmul.mubr.msk.f32.vlgmr.msra.gmra.mxu1 %vm429_vm3, %v2338_v51  ;;  %v2505_v41 = vpop.permute.xlu1 %2504  ;;  %v2674_v42 = vpop.permute.xlu0 %2673  ;;  %v2853_v51 = vld [vmem:[%s4882_s7 + $0xe0] sm:$0xff] }
0x10f3   :  { %3732 = vmatpush3.xpose.msk.msra.mxu1 %vm429_vm3, %v2507_v54  ;;  %3733 = vmatprep.mubr.msk.f32.mxu1 %vm3858_vm0, %v3857_v1 }
0x10f4   :  { %3741 = vmatprep.subr.mxu1 %v3857_v1 }
0x10f6   :  { %3734 = vmatmul.mubr.msk.f32.vlgmr.msra.gmra.mxu1 %vm429_vm3, %v2505_v41  ;;  %v2672_v63 = vpop.permute.xlu1 %2671 }
0x10f7   :  { %3742 = vmatpush3.xpose.msk.msra.mxu1 %vm429_vm3, %v2674_v42  ;;  %3743 = vmatprep.mubr.msk.f32.mxu1 %vm3858_vm0, %v3857_v1 }
0x10f8   :  { %3751 = vmatprep.subr.mxu1 %v3857_v1 }
0x10fa   :  { %3744 = vmatmul.mubr.msk.f32.vlgmr.msra.gmra.mxu1 %vm429_vm3, %v2672_v63 }
0x10fb   :  { %3759 = vmatprep.mubr.msk.f32.mxu1 %vm3858_vm0, %v3857_v1 }
0x11ae   :  { %v2241_v2 = vpop.f32.mrf.mxu1 }
0x11af   :  { %v2245_v3 = vmul.f32 0.35355338, %v2241_v2 }
0x11b0   :  { %v3715_v61 = vpop.f32.mrf.mxu1 }
0x11b1   :  { %v2247_v62 = vsel %vm2246_vm8, %v2245_v3, -inf }
0x11b2   :  { %2248 = vmax.xlane.f32.xlu0 %v2247_v62  ;;  %v2411_v4 = vpop.f32.mrf.mxu1 }
0x11b3   :  { %v2415_v0 = vmul.f32 0.35355338, %v2411_v4 }
0x11b4   :  { %v3725_v18 = vpop.f32.mrf.mxu1 }
0x11b5   :  { %v2416_v20 = vsel %vm2246_vm8, %v2415_v0, -inf }
0x11b6   :  { %2417 = vmax.xlane.f32.xlu1 %v2416_v20  ;;  %v2578_v21 = vpop.f32.mrf.mxu1 }
0x11b7   :  { %v2582_v23 = vmul.f32 0.35355338, %v2578_v21 }
0x11b8   :  { %v3735_v13 = vpop.f32.mrf.mxu1 }
0x11b9   :  { %v2583_v24 = vsel %vm2246_vm8, %v2582_v23, -inf  ;;  %v2945_v13 = vld [vmem:[%s4882_s7 + $0x110] sm:$0xff] }
0x11ba   :  { %2584 = vmax.xlane.f32.xlu0 %v2583_v24  ;;  %v2745_v28 = vpop.f32.mrf.mxu1  ;;  %v2944_v24 = vld [vmem:[%s4882_s7 + $0x108] sm:$0xff] }
0x11bb   :  { %v2749_v9 = vmul.f32 0.35355338, %v2745_v28  ;;  %v2943_v28 = vld [vmem:[%s4882_s7 + $0x100] sm:$0xff] }
0x11bc   :  { %v3745_v10 = vpop.f32.mrf.mxu1 }
0x11bd   :  { %v2750_v33 = vsel %vm2246_vm8, %v2749_v9, -inf  ;;  %v2860_v10 = vrot.slane %v4661_v29, %v4042_v30  ;;  %v3025_v30 = vld [vmem:[%s4882_s7 + $0x128] sm:$0xff] }
0x11be   :  { %2751 = vmax.xlane.f32.xlu0 %v2750_v33 }
0x11c7   :  { %2258 = vrot.lane.b32.xlu1 %v4744_v34, %s3861_s17  ;;  %s3869_s17 = smov 40  }
0x123b   :  { %v2249_v35 = vpop.xlane.xlu0 %2248 }
0x123c   :  { %v2250_v36 = vsub.f32 %v2245_v3, %v2249_v35 }
0x123e   :  { %v2251_v37 = vmul.f32 1.442695, %v2250_v36 }
0x123f   :  { %v2418_v12 = vpop.xlane.xlu1 %2417 }
0x1240   :  { %3816 = vpow2.f32 %v2251_v37  ;;  %v2419_v38 = vsub.f32 %v2415_v0, %v2418_v12 }
0x1242   :  { %v2420_v43 = vmul.f32 1.442695, %v2419_v38 }
0x1243   :  { %v2259_v45 = vpop.permute.xlu1 %2258  ;;  %v2585_v46 = vpop.xlane.xlu0 %2584 }
0x1244   :  { %3818 = vpow2.f32 %v2420_v43  ;;  %v2586_v47 = vsub.f32 %v2582_v23, %v2585_v46  ;;  %3717 = vmatpush3.msk.msra.mxu0 %vm2264_vm9, %v2259_v45  ;;  %v2946_v23 = vld [vmem:[%s4882_s7 + $0x118] sm:$0xff] }
0x1245   :  { %3726 = vmatprep.subr.mxu0 %v3857_v1 }
0x1246   :  { %v2587_v48 = vmul.f32 1.442695, %v2586_v47 }
0x1247   :  { %v2752_v49 = vpop.xlane.xlu0 %2751 }
0x1248   :  { %3820 = vpow2.f32 %v2587_v48  ;;  %v2753_v50 = vsub.f32 %v2749_v9, %v2752_v49  ;;  %v3027_v9 = vld [vmem:[%s4882_s7 + $0x138] sm:$0xff]  ;;  %v3026_v49 = vld [vmem:[%s4882_s7 + $0x130] sm:$0xff] }
0x124a   :  { %v2754_v52 = vmul.f32 1.442695, %v2753_v50  ;;  %v3024_v50 = vld [vmem:[%s4882_s7 + $0x120] sm:$0xff] }
0x124c   :  { %3822 = vpow2.f32 %v2754_v52  ;;  %v2948_v52 = vrot.slane %v4661_v29, 2 }
0x124d   :  { %v3817_v53 = vpop.eup %3816 }
0x124e   :  { %v2253_v57 = vsel %vm2246_vm8, %v3817_v53, 0.0 }
0x124f   :  { %2254 = vadd.xlane.f32.xlu1 %v2253_v57 }
0x1251   :  { %v3819_v58 = vpop.eup %3818 }
0x1252   :  { %v2422_v39 = vsel %vm2246_vm8, %v3819_v58, 0.0 }
0x1253   :  { %2423 = vadd.xlane.f32.xlu0 %v2422_v39 }
0x1255   :  { %v3821_v25 = vpop.eup %3820 }
0x1256   :  { %v2589_v40 = vsel %vm2246_vm8, %v3821_v25, 0.0 }
0x1257   :  { %2590 = vadd.xlane.f32.xlu1 %v2589_v40 }
0x1259   :  { %v3823_v27 = vpop.eup %3822 }
0x125a   :  { %v2756_v44 = vsel %vm2246_vm8, %v3823_v27, 0.0 }
0x125b   :  { %2757 = vadd.xlane.f32.xlu0 %v2756_v44 }
0x1268   :  { %2594 = vrot.lane.b32.xlu1 %v4744_v34, %s3868_s3 }
0x126c   :  { %2761 = vrot.lane.b32.xlu1 %v4744_v34, %s3869_s17 }
0x1271   :  { %2427 = vrot.lane.b32.xlu0 %v4744_v34, %s3870_s13  ;;  %v2856_v34 = vld [vmem:[%s4882_s7 + $0xf8] sm:$0xff]  ;;  %s3874_s7 = smov [#allocation2]  }
0x1272   :  { %3752 = vmatpush3.msra.mxu1 %v2856_v34  ;;  %s3130_s17 = sshll.u32 %s3874_s7, 4  ;;  %s3131_s17 = int_to_ptr.vmem [resolvable:$true] %s3130_s17 }
0x1273   :  { %3753 = vmatprep.subr.mxu1 %v3857_v1  ;;  %s3835_s13 = scalar_lea.vmem %s3131_s17, 16  ;;  %s3839_s14 = scalar_lea.vmem %s3131_s17, 32 }
0x1274   :  { %3754 = vmatpush3.msra.mxu1 %v2855_v60  ;;  %p3836_p0 = scmp.ne.s32.totalorder %s3131_s17, %s3835_s13  ;;  %p3840_p1 = scmp.lt.s32.totalorder %s3131_s17, %s3131_s17 }
0x1275   :  { %3755 = vmatprep.subr.mxu1 %v3857_v1  ;;  %p3841_p2 = scmp.lt.s32.totalorder %s3839_s14, %s3835_s13 }
0x1276   :  { %3756 = vmatpush3.msra.mxu1 %v2854_v11 }
0x1277   :  { %3757 = vmatprep.subr.mxu1 %v3857_v1  ;;  %p3842_p3 = por %p3841_p2, %p3840_p1 }
0x1278   :  { %3758 = vmatpush3.msra.mxu1 %v2853_v51 }
0x1279   :  { %3773 = vmatprep.subr.mxu1 %v3857_v1  ;;  %p3843_p4 = pnand %p3842_p3, %p3836_p0 }
0x12d8   :  { %v2255_v55 = vpop.xlane.xlu1 %2254 }
0x12d9   :  { %3824 = vrcp.f32 %v2255_v55 }
0x12dc   :  { %v2424_v59 = vpop.xlane.xlu0 %2423 }
0x12dd   :  { %3826 = vrcp.f32 %v2424_v59 }
0x12e0   :  { %v2591_v26 = vpop.xlane.xlu1 %2590 }
0x12e1   :  { %3828 = vrcp.f32 %v2591_v26 }
0x12e4   :  { %v2758_v56 = vpop.xlane.xlu0 %2757  ;;  %v2595_v19 = vpop.permute.xlu1 %2594 }
0x12e5   :  { %3830 = vrcp.f32 %v2758_v56 }
0x12e6   :  { %v3825_v5 = vpop.eup %3824 }
0x12e7   :  { %v2257_v6 = vmul.f32 %v3825_v5, %v3817_v53 }
0x12e8   :  { %v2428_v7 = vpop.permute.xlu0 %2427  ;;  %v2762_v17 = vpop.permute.xlu1 %2761 }
0x12e9   :  { %3719 = vmatmul.mubr.msk.f32.vlgmr.msra.gmra.mxu0 %vm2260_vm10, %v2257_v6 }
0x12ea   :  { %v3827_v14 = vpop.eup %3826  ;;  %3727 = vmatpush3.msk.msra.mxu0 %vm2264_vm9, %v2428_v7  ;;  %3728 = vmatprep.mubr.msk.f32.mxu0 %vm3858_vm0, %v3857_v1 }
0x12eb   :  { %3736 = vmatprep.subr.mxu0 %v3857_v1  ;;  %v2426_v16 = vmul.f32 %v3827_v14, %v3819_v58 }
0x12ed   :  { %3729 = vmatmul.mubr.msk.f32.vlgmr.msra.gmra.mxu0 %vm2260_vm10, %v2426_v16 }
0x12ee   :  { %v3829_v22 = vpop.eup %3828  ;;  %3737 = vmatpush3.msk.msra.mxu0 %vm2264_vm9, %v2595_v19  ;;  %3738 = vmatprep.mubr.msk.f32.mxu0 %vm3858_vm0, %v3857_v1  ;;  %v3117_v19 = vrot.slane %v4661_v29, 6 }
0x12ef   :  { %3746 = vmatprep.subr.mxu0 %v3857_v1  ;;  %v2593_v15 = vmul.f32 %v3829_v22, %v3821_v25  ;;  %v3028_v25 = vrot.slane %v4661_v29, 3 }
0x12f1   :  { %3739 = vmatmul.mubr.msk.f32.vlgmr.msra.gmra.mxu0 %vm2260_vm10, %v2593_v15  ;;  %v3120_v15 = vrot.slane %v4661_v29, 7 }
0x12f2   :  { %v3831_v31 = vpop.eup %3830  ;;  %3747 = vmatpush3.msk.msra.mxu0 %vm2264_vm9, %v2762_v17  ;;  %3748 = vmatprep.mubr.msk.f32.mxu0 %vm3858_vm0, %v3857_v1 }
0x12f3   :  { %v2760_v32 = vmul.f32 %v3831_v31, %v3823_v27  ;;  %3762 = vmatprep.subr.mxu0 %v3857_v1 }
0x12f5   :  { %3749 = vmatmul.mubr.msk.f32.vlgmr.msra.gmra.mxu0 %vm2260_vm10, %v2760_v32 }
0x12f6   :  { %3770 = vmatprep.mubr.msk.f32.mxu0 %vm3858_vm0, %v3857_v1  ;;  %3763 = vmatpush3.msra.mxu0 %v2946_v23 }
0x12f7   :  { %3764 = vmatprep.subr.mxu0 %v3857_v1 }
0x12f8   :  { %3765 = vmatpush3.msra.mxu0 %v2945_v13 }
0x12f9   :  { %3766 = vmatprep.subr.mxu0 %v3857_v1 }
0x12fa   :  { %3767 = vmatpush3.msra.mxu0 %v2944_v24 }
0x12fb   :  { %3768 = vmatprep.subr.mxu0 %v3857_v1 }
0x12fc   :  { %3769 = vmatpush3.msra.mxu0 %v2943_v28 }
0x13a9   :  { %v2333_v8 = vpop.f32.mrf.mxu0 }
0x13ab   :  { %v3720_v54 = vpop.f32.mrf.mxu0 }
0x13ad   :  { %v2500_v41 = vpop.f32.mrf.mxu0 }
0x13ae   :  { %2839 = vrot.lane.b32.xlu0 %v2500_v41, %s3871_s6 }
0x13af   :  { %v3730_v42 = vpop.f32.mrf.mxu0 }
0x13b1   :  { %v2667_v63 = vpop.f32.mrf.mxu0 }
0x13b2   :  { %2843 = vrot.lane.b32.xlu1 %v2667_v63, %s3872_s21 }
0x13b3   :  { %v3740_v2 = vpop.f32.mrf.mxu0 }
0x13b5   :  { %v2834_v3 = vpop.f32.mrf.mxu0 }
0x13b6   :  { %2847 = vrot.lane.b32.xlu0 %v2834_v3, %s3873_s22 }
0x13b7   :  { %v3750_v61 = vpop.f32.mrf.mxu0 }
0x1420   :  { %v2840_v62 = vpop.permute.xlu0 %2839 }
0x1421   :  { %v2850_v0 = vsel %vm429_vm3, %v2333_v8, %v2840_v62 }
0x1424   :  { %v2844_v4 = vpop.permute.xlu1 %2843 }
0x1425   :  { %v2851_v18 = vsel %vm67_vm1, %v2850_v0, %v2844_v4 }
0x1428   :  { %v2848_v20 = vpop.permute.xlu0 %2847 }
0x1429   :  { %v2852_v21 = vsel %vm255_vm4, %v2851_v18, %v2848_v20 }
0x142a   :  { %3760 = vmatmul.mubr.msk.f32.vlgmr.msra.gmra.mxu1 %vm165_vm2, %v2852_v21 }
0x142b   :  { %3781 = vmatprep.mubr.msk.f32.mxu1 %vm3858_vm0, %v3857_v1  ;;  %3774 = vmatpush3.msra.mxu1 %v3027_v9 }
0x142c   :  { %3775 = vmatprep.subr.mxu1 %v3857_v1 }
0x142d   :  { %3776 = vmatpush3.msra.mxu1 %v3026_v49 }
0x142e   :  { %3777 = vmatprep.subr.mxu1 %v3857_v1 }
0x142f   :  { %3778 = vmatpush3.msra.mxu1 %v3025_v30 }
0x1430   :  { %3779 = vmatprep.subr.mxu1 %v3857_v1 }
0x1431   :  { %3780 = vmatpush3.msra.mxu1 %v3024_v50 }
0x14ea   :  { %v2930_v33 = vpop.f32.mrf.mxu1 }
0x14eb   :  { %v2931_v35 = vadd.f32 %v2930_v33, %v2860_v10 }
0x14ec   :  { %v3761_v36 = vpop.f32.mrf.mxu1 }
0x14ed   :  { %v2934_v37 = vsel %vm2048_vm7, %v2931_v35, 0.0 }
0x14ee   :  { %v2935_v12 = vrot.slane %v2934_v37, 4 }
0x14f0   :  { %v2936_v38 = vadd.f32 %v2935_v12, %v2934_v37 }
0x14f2   :  { %v2937_v43 = vrot.slane %v2936_v38, 2 }
0x14f4   :  { %v2938_v45 = vadd.f32 %v2937_v43, %v2936_v38 }
0x14f6   :  { %v2939_v46 = vrot.slane %v2938_v45, 1 }
0x14f8   :  { %v2940_v47 = vadd.f32 %v2939_v46, %v2938_v45 }
0x14fa   :  { %v2942_v48 = vmul.f32 0.33333334, %v2940_v47 }
0x14fc   :  { %3771 = vmatmul.mubr.msk.f32.vlgmr.msra.gmra.mxu0 %vm165_vm2, %v2942_v48 }
0x15bc   :  { %v3019_v53 = vpop.f32.mrf.mxu0 }
0x15bd   :  { %v3020_v57 = vadd.f32 %v3019_v53, %v2948_v52 }
0x15be   :  { %v3772_v58 = vpop.f32.mrf.mxu0 }
0x15bf   :  { %v3023_v39 = vmax.f32 %v3020_v57, 0.0 }
0x15c1   :  { %3782 = vmatmul.mubr.msk.f32.vlgmr.msra.gmra.mxu1 %vm165_vm2, %v3023_v39 }
0x1681   :  { %v3099_v40 = vpop.f32.mrf.mxu1 }
0x1682   :  { %v3100_v27 = vadd.f32 %v3099_v40, %v3028_v25 }
0x1683   :  { %v3783_v44 = vpop.f32.mrf.mxu1 }
0x1684   :  { %v3104_v55 = vsel %vm3103_vm11, %v3100_v27, 0.0 }
0x1685   :  { %3105 = vadd.xlane.f32.xlu1 %v3104_v55 }
0x170e   :  { %v3106_v59 = vpop.xlane.xlu1 %3105 }
0x170f   :  { %v3107_v1 = vmul.f32 0.03125, %v3106_v59 }
0x1711   :  { %v3108_v26 = vsub.f32 %v3100_v27, %v3107_v1 }
0x1713   :  { %v3109_v56 = vmul.f32 %v3108_v26, %v3108_v26 }
0x1715   :  { %v3110_v5 = vsel %vm3103_vm11, %v3109_v56, 0.0 }
0x1716   :  { %3111 = vadd.xlane.f32.xlu0 %v3110_v5 }
0x179f   :  { %v3112_v6 = vpop.xlane.xlu0 %3111 }
0x17a0   :  { %v3113_v7 = vmul.f32 0.03125, %v3112_v6 }
0x17a2   :  { %v3114_v14 = vadd.f32 1e-05, %v3113_v7 }
0x17a4   :  { %3832 = vrsqrt.f32 %v3114_v14 }
0x17b1   :  { %v3833_v16 = vpop.eup %3832 }
0x17b2   :  { %v3116_v22 = vmul.f32 %v3833_v16, %v3108_v26 }
0x17b4   :  { %v3119_v17 = vmul.f32 %v3117_v19, %v3116_v22 }
0x17b6   :  { %v3122_v31 = vadd.f32 %v3120_v15, %v3119_v17 }
0x17b8   :  { %3123 = vst.msk [vmem:[#allocation2] sm:$0x1] %vm3103_vm11, %v3122_v31 }
0x17b9   :  { %3846 = shalt.err (!%p3843_p4)
}
0x17ba   :  { %3133 = dma.vmem_to_hbm [thread:$0]  %s3131_s17, 16, %s4886_s11, [#allocation3]  }
0x17bb   :  { %3855 = dma.done.wait [#allocation3], 16  }
0x17bc   :  { %3856 = vsyncadd [#allocation3], 4294967280 }
0x17bd   :  { %3137 = vsyncpa [#allocation3], 1 }

</bundles_post_ra>
